<compile_context>
chip_gen: v7x
topology: tpu7x:2x2x1
jax: 0.10.0
libtpu: 0.0.40
codegen_flags: <defaults>
</compile_context>

<pallas_src>
import jax
import jax.numpy as jnp
from jax.experimental import pallas as pl
from jax.experimental.pallas import tpu as pltpu


def _round_up(x, m):
    return (x + m - 1) // m * m


def _gru_kernel(x_ref, wih_ref, whh_ref, bgi_ref, bhn_ref, out_ref, h_scratch):
    """One time-chunk of the GRU recurrence.

    x_ref:     (T, B, F)   input chunk (zero-padded to lane/sublane multiples)
    wih_ref:   (F, 3H)     fused input-projection weights, gate order [r|z|n]
    whh_ref:   (H, 3H)     fused hidden-projection weights, gate order [r|z|n]
    bgi_ref:   (1, 3H)     folded biases [b_ir+b_hr | b_iz+b_hz | b_in]
    bhn_ref:   (1, H)      b_hn (kept separate: it is scaled by r)
    out_ref:   (T, B, H)   per-step hidden outputs
    h_scratch: (B, H) f32  recurrent state, persists across grid steps
    """
    @pl.when(pl.program_id(0) == 0)
    def _():
        h_scratch[...] = jnp.zeros_like(h_scratch)

    T, B, F = x_ref.shape
    H = bhn_ref.shape[-1]

    # Hoisted input projection: a single (T*B, F) @ (F, 3H) MXU pass for the
    # whole chunk instead of 3 tiny matmuls per timestep.
    x = x_ref[...].reshape(T * B, F)
    gi = jnp.dot(x, wih_ref[...], preferred_element_type=jnp.float32) + bgi_ref[...]

    whh = whh_ref[...]
    b_hn = bhn_ref[...]
    h = h_scratch[...]

    # Fully-unrolled serial recurrence over the chunk (static indices; the
    # only per-step matmul left is the fused (B, H) @ (H, 3H)).
    for t in range(T):
        gh = jnp.dot(h, whh, preferred_element_type=jnp.float32)   # (B, 3H)
        gi_t = gi[t * B:(t + 1) * B]                                # (B, 3H)
        r = jax.nn.sigmoid(gi_t[:, 0:H] + gh[:, 0:H])
        z = jax.nn.sigmoid(gi_t[:, H:2 * H] + gh[:, H:2 * H])
        n = jnp.tanh(gi_t[:, 2 * H:3 * H] + r * (gh[:, 2 * H:3 * H] + b_hn))
        h = (1.0 - z) * n + z * h
        out_ref[t] = h.astype(out_ref.dtype)

    h_scratch[...] = h


def encoder_forward(inputs, w_ih, w_hh, b_ih, b_hh, *, t_chunk=8):
    """GRU encoder forward (matches torch.nn.GRU, 1 layer, unidirectional).

    inputs: (S, B, F) float32
    w_ih:   (3H, F)  PyTorch weight_ih_l0 layout (gate order r, z, n)
    w_hh:   (3H, H)
    b_ih:   (3H,)
    b_hh:   (3H,)
    returns (outputs (S, B, H), hidden (1, B, H))
    """
    S, B, F = inputs.shape
    H = w_hh.shape[1]

    # Lane/sublane-dense padded compute shapes.
    B_pad = _round_up(B, 8)
    F_pad = _round_up(F, 128)
    H_pad = _round_up(H, 128)
    S_pad = _round_up(S, t_chunk)

    f32 = jnp.float32
    wih_g = w_ih.astype(f32).reshape(3, H, F)      # (3, H, F)
    whh_g = w_hh.astype(f32).reshape(3, H, H)      # (3, H, H)
    bih_g = b_ih.astype(f32).reshape(3, H)
    bhh_g = b_hh.astype(f32).reshape(3, H)

    # Fused + padded weights: columns [g*H_pad : g*H_pad+H] hold gate g.
    # Zero padding keeps padded hidden columns identically zero through the
    # recurrence (so slicing at the end is exact).
    wih_all = jnp.zeros((F_pad, 3 * H_pad), f32)
    whh_all = jnp.zeros((H_pad, 3 * H_pad), f32)
    for g in range(3):
        wih_all = wih_all.at[:F, g * H_pad:g * H_pad + H].set(wih_g[g].T)
        whh_all = whh_all.at[:H, g * H_pad:g * H_pad + H].set(whh_g[g].T)

    # Folded biases: r/z get (b_i + b_h); n keeps b_in with the input
    # projection and b_hn separately (it is multiplied by r).
    bgi = jnp.zeros((1, 3 * H_pad), f32)
    bgi = bgi.at[0, 0 * H_pad:0 * H_pad + H].set(bih_g[0] + bhh_g[0])
    bgi = bgi.at[0, 1 * H_pad:1 * H_pad + H].set(bih_g[1] + bhh_g[1])
    bgi = bgi.at[0, 2 * H_pad:2 * H_pad + H].set(bih_g[2])
    bhn = jnp.zeros((1, H_pad), f32)
    bhn = bhn.at[0, :H].set(bhh_g[2])

    x_pad = jnp.zeros((S_pad, B_pad, F_pad), inputs.dtype)
    x_pad = x_pad.at[:S, :B, :F].set(inputs)

    out_padded = pl.pallas_call(
        _gru_kernel,
        out_shape=jax.ShapeDtypeStruct((S_pad, B_pad, H_pad), inputs.dtype),
        grid_spec=pltpu.PrefetchScalarGridSpec(
            num_scalar_prefetch=0,
            grid=(S_pad // t_chunk,),
            in_specs=[
                pl.BlockSpec((t_chunk, B_pad, F_pad), lambda c: (c, 0, 0)),
                # Constant-index weight/bias blocks (no re-DMA across steps).
                # For realistic H, add pipeline_mode=pl.Buffered(1) here to
                # halve their VMEM footprint (negligible at these shapes).
                pl.BlockSpec((F_pad, 3 * H_pad), lambda c: (0, 0)),
                pl.BlockSpec((H_pad, 3 * H_pad), lambda c: (0, 0)),
                pl.BlockSpec((1, 3 * H_pad), lambda c: (0, 0)),
                pl.BlockSpec((1, H_pad), lambda c: (0, 0)),
            ],
            out_specs=pl.BlockSpec((t_chunk, B_pad, H_pad), lambda c: (c, 0, 0)),
            scratch_shapes=[pltpu.VMEM((B_pad, H_pad), jnp.float32)],
        ),
        compiler_params=pltpu.CompilerParams(
            dimension_semantics=("arbitrary",),     # time axis is sequential
            vmem_limit_bytes=32 * 1024 * 1024,
        ),
    )(x_pad, wih_all, whh_all, bgi, bhn)

    outputs = out_padded[:S, :B, :H]
    hidden = outputs[-1:]            # (1, B, H) final hidden state
    return outputs, hidden


def _reference_gru(inputs, w_ih, w_hh, b_ih, b_hh):
    """Pure-JAX reference matching torch.nn.GRU (1 layer, unidirectional)."""
    S, B, F = inputs.shape
    H = w_hh.shape[1]
    w_ir, w_iz, w_in = jnp.split(w_ih, 3, axis=0)
    w_hr, w_hz, w_hn = jnp.split(w_hh, 3, axis=0)
    b_ir, b_iz, b_in = jnp.split(b_ih, 3)
    b_hr, b_hz, b_hn = jnp.split(b_hh, 3)

    def step(h, x):
        r = jax.nn.sigmoid(x @ w_ir.T + b_ir + h @ w_hr.T + b_hr)
        z = jax.nn.sigmoid(x @ w_iz.T + b_iz + h @ w_hz.T + b_hz)
        n = jnp.tanh(x @ w_in.T + b_in + r * (h @ w_hn.T + b_hn))
        h_new = (1.0 - z) * n + z * h
        return h_new, h_new

    h0 = jnp.zeros((B, H), jnp.float32)
    h_last, outs = jax.lax.scan(step, h0, inputs)
    return outs, h_last[None]


if __name__ == "__main__":
    # Small shapes consistent with the module's forward pass.
    # seq_len deliberately not a multiple of the time chunk to exercise the
    # padding path.
    seq_len, batch, features_dim, hidden_dim = 12, 4, 8, 16

    key = jax.random.PRNGKey(0)
    k_x, k1, k2, k3, k4 = jax.random.split(key, 5)

    # Deterministic parameter init matching PyTorch's U(-1/sqrt(H), 1/sqrt(H)).
    bound = 1.0 / (hidden_dim ** 0.5)
    w_ih = jax.random.uniform(k1, (3 * hidden_dim, features_dim),
                              jnp.float32, -bound, bound)
    w_hh = jax.random.uniform(k2, (3 * hidden_dim, hidden_dim),
                              jnp.float32, -bound, bound)
    b_ih = jax.random.uniform(k3, (3 * hidden_dim,), jnp.float32, -bound, bound)
    b_hh = jax.random.uniform(k4, (3 * hidden_dim,), jnp.float32, -bound, bound)

    inputs = jax.random.normal(k_x, (seq_len, batch, features_dim), jnp.float32)

    outputs, hidden = encoder_forward(inputs, w_ih, w_hh, b_ih, b_hh, t_chunk=8)
    jax.block_until_ready((outputs, hidden))

    ref_out, ref_hidden = _reference_gru(inputs, w_ih, w_hh, b_ih, b_hh)
    assert outputs.shape == (seq_len, batch, hidden_dim)
    assert hidden.shape == (1, batch, hidden_dim)
    assert jnp.allclose(outputs, ref_out, atol=1e-4, rtol=1e-4)
    assert jnp.allclose(hidden, ref_hidden, atol=1e-4, rtol=1e-4)

    print("KERNEL_OK")
</pallas_src>

<mosaic_0001>
module attributes {stable_mosaic.version = 11 : i64} {
  func.func @_gru_kernel(%arg0: i32, %arg1: memref<8x8x128xf32, #tpu.memory_space<vmem>>, %arg2: memref<128x384xf32, #tpu.memory_space<vmem>>, %arg3: memref<128x384xf32, #tpu.memory_space<vmem>>, %arg4: memref<1x384xf32, #tpu.memory_space<vmem>>, %arg5: memref<1x128xf32, #tpu.memory_space<vmem>>, %arg6: memref<8x8x128xf32, #tpu.memory_space<vmem>>, %arg7: memref<8x128xf32, #tpu.memory_space<vmem>>) attributes {dimension_semantics = [#tpu.dimension_semantics<arbitrary>], iteration_bounds = array<i64: 2>, scalar_prefetch = 0 : i64, scratch_operands = 1 : i64, tpu.core_type = #tpu.core_type<tc>, window_params = [{transform_indices = @transform_0, window_bounds = array<i64: 8, 8, 128>}, {pipeline_mode = #tpu.pipeline_mode<synchronous>, transform_indices = @transform_1, window_bounds = array<i64: 128, 384>}, {pipeline_mode = #tpu.pipeline_mode<synchronous>, transform_indices = @transform_2, window_bounds = array<i64: 128, 384>}, {pipeline_mode = #tpu.pipeline_mode<synchronous>, transform_indices = @transform_3, window_bounds = array<i64: 1, 384>}, {pipeline_mode = #tpu.pipeline_mode<synchronous>, transform_indices = @transform_4, window_bounds = array<i64: 1, 128>}, {transform_indices = @transform_5, window_bounds = array<i64: 8, 8, 128>}]} {
    %c0_i32 = arith.constant 0 : i32
    %0 = arith.cmpi eq, %arg0, %c0_i32 : i32
    %1 = arith.extui %0 : i1 to i32
    %c0_i32_0 = arith.constant 0 : i32
    %2 = arith.cmpi ne, %1, %c0_i32_0 : i32
    scf.if %2 {
      %cst_64 = arith.constant 0.000000e+00 : f32
      %278 = vector.broadcast %cst_64 : f32 to vector<8x128xf32>
      %c0_65 = arith.constant 0 : index
      %c0_66 = arith.constant 0 : index
      %279 = vector.load %arg7[%c0_65, %c0_66] : memref<8x128xf32, #tpu.memory_space<vmem>>, vector<8x128xf32>
      tpu.vector_store %arg7[%c0_65, %c0_66], %278 {strides = array<i32>} : memref<8x128xf32, #tpu.memory_space<vmem>>, vector<8x128xf32>,
    } else {
    }
    %c0 = arith.constant 0 : index
    %c0_1 = arith.constant 0 : index
    %c0_2 = arith.constant 0 : index
    %3 = vector.load %arg1[%c0, %c0_1, %c0_2] : memref<8x8x128xf32, #tpu.memory_space<vmem>>, vector<8x8x128xf32>
    %4 = vector.shape_cast %3 : vector<8x8x128xf32> to vector<64x128xf32>
    %c0_3 = arith.constant 0 : index
    %c0_4 = arith.constant 0 : index
    %5 = vector.load %arg2[%c0_3, %c0_4] : memref<128x384xf32, #tpu.memory_space<vmem>>, vector<128x384xf32>
    %cst = arith.constant dense<0.000000e+00> : vector<64x384xf32>
    %6 = tpu.matmul %4, %5, %cst {dimension_numbers = #tpu.dot_dimension_numbers<[1], [0], [0], [1], [0, 0, 1, 1], [], []>} : vector<64x128xf32>, vector<128x384xf32>, vector<64x384xf32> -> vector<64x384xf32>
    %c0_5 = arith.constant 0 : index
    %c0_6 = arith.constant 0 : index
    %7 = vector.load %arg4[%c0_5, %c0_6] : memref<1x384xf32, #tpu.memory_space<vmem>>, vector<1x384xf32>
    %8 = vector.broadcast %7 : vector<1x384xf32> to vector<64x384xf32>
    %9 = arith.addf %6, %8 : vector<64x384xf32>
    %c0_7 = arith.constant 0 : index
    %c0_8 = arith.constant 0 : index
    %10 = vector.load %arg3[%c0_7, %c0_8] : memref<128x384xf32, #tpu.memory_space<vmem>>, vector<128x384xf32>
    %c0_9 = arith.constant 0 : index
    %c0_10 = arith.constant 0 : index
    %11 = vector.load %arg5[%c0_9, %c0_10] : memref<1x128xf32, #tpu.memory_space<vmem>>, vector<1x128xf32>
    %c0_11 = arith.constant 0 : index
    %c0_12 = arith.constant 0 : index
    %12 = vector.load %arg7[%c0_11, %c0_12] : memref<8x128xf32, #tpu.memory_space<vmem>>, vector<8x128xf32>
    %cst_13 = arith.constant dense<0.000000e+00> : vector<8x384xf32>
    %13 = tpu.matmul %12, %10, %cst_13 {dimension_numbers = #tpu.dot_dimension_numbers<[1], [0], [0], [1], [0, 0, 1, 1], [], []>} : vector<8x128xf32>, vector<128x384xf32>, vector<8x384xf32> -> vector<8x384xf32>
    %14 = vector.extract_strided_slice %9 {offsets = [0, 0], sizes = [8, 384], strides = [1, 1]} : vector<64x384xf32> to vector<8x384xf32>
    %15 = vector.extract_strided_slice %14 {offsets = [0, 0], sizes = [8, 128], strides = [1, 1]} : vector<8x384xf32> to vector<8x128xf32>
    %16 = vector.extract_strided_slice %13 {offsets = [0, 0], sizes = [8, 128], strides = [1, 1]} : vector<8x384xf32> to vector<8x128xf32>
    %17 = arith.addf %15, %16 : vector<8x128xf32>
    %18 = arith.negf %17 : vector<8x128xf32>
    %19 = math.exp %18 : vector<8x128xf32>
    %cst_14 = arith.constant 1.000000e+00 : f32
    %20 = vector.broadcast %cst_14 : f32 to vector<8x128xf32>
    %21 = arith.addf %20, %19 : vector<8x128xf32>
    %22 = arith.divf %20, %21 : vector<8x128xf32>
    %23 = vector.extract_strided_slice %14 {offsets = [0, 128], sizes = [8, 128], strides = [1, 1]} : vector<8x384xf32> to vector<8x128xf32>
    %24 = vector.extract_strided_slice %13 {offsets = [0, 128], sizes = [8, 128], strides = [1, 1]} : vector<8x384xf32> to vector<8x128xf32>
    %25 = arith.addf %23, %24 : vector<8x128xf32>
    %26 = arith.negf %25 : vector<8x128xf32>
    %27 = math.exp %26 : vector<8x128xf32>
    %cst_15 = arith.constant 1.000000e+00 : f32
    %28 = vector.broadcast %cst_15 : f32 to vector<8x128xf32>
    %29 = arith.addf %28, %27 : vector<8x128xf32>
    %30 = arith.divf %28, %29 : vector<8x128xf32>
    %31 = vector.extract_strided_slice %14 {offsets = [0, 256], sizes = [8, 128], strides = [1, 1]} : vector<8x384xf32> to vector<8x128xf32>
    %32 = vector.extract_strided_slice %13 {offsets = [0, 256], sizes = [8, 128], strides = [1, 1]} : vector<8x384xf32> to vector<8x128xf32>
    %33 = vector.broadcast %11 : vector<1x128xf32> to vector<8x128xf32>
    %34 = arith.addf %32, %33 : vector<8x128xf32>
    %35 = arith.mulf %22, %34 : vector<8x128xf32>
    %36 = arith.addf %31, %35 : vector<8x128xf32>
    %37 = math.tanh %36 : vector<8x128xf32>
    %cst_16 = arith.constant 1.000000e+00 : f32
    %38 = vector.broadcast %cst_16 : f32 to vector<8x128xf32>
    %39 = arith.subf %38, %30 : vector<8x128xf32>
    %40 = arith.mulf %39, %37 : vector<8x128xf32>
    %41 = arith.mulf %30, %12 : vector<8x128xf32>
    %42 = arith.addf %40, %41 : vector<8x128xf32>
    %c0_17 = arith.constant 0 : index
    %c0_18 = arith.constant 0 : index
    %c0_19 = arith.constant 0 : index
    %43 = vector.load %arg6[%c0_17, %c0_18, %c0_19] : memref<8x8x128xf32, #tpu.memory_space<vmem>>, vector<1x8x128xf32>
    %44 = vector.shape_cast %43 : vector<1x8x128xf32> to vector<8x128xf32>
    %45 = vector.shape_cast %42 : vector<8x128xf32> to vector<1x8x128xf32>
    tpu.vector_store %arg6[%c0_17, %c0_18, %c0_19], %45 {strides = array<i32>} : memref<8x8x128xf32, #tpu.memory_space<vmem>>, vector<1x8x128xf32>,
    %cst_20 = arith.constant dense<0.000000e+00> : vector<8x384xf32>
    %46 = tpu.matmul %42, %10, %cst_20 {dimension_numbers = #tpu.dot_dimension_numbers<[1], [0], [0], [1], [0, 0, 1, 1], [], []>} : vector<8x128xf32>, vector<128x384xf32>, vector<8x384xf32> -> vector<8x384xf32>
    %47 = vector.extract_strided_slice %9 {offsets = [8, 0], sizes = [8, 384], strides = [1, 1]} : vector<64x384xf32> to vector<8x384xf32>
    %48 = vector.extract_strided_slice %47 {offsets = [0, 0], sizes = [8, 128], strides = [1, 1]} : vector<8x384xf32> to vector<8x128xf32>
    %49 = vector.extract_strided_slice %46 {offsets = [0, 0], sizes = [8, 128], strides = [1, 1]} : vector<8x384xf32> to vector<8x128xf32>
    %50 = arith.addf %48, %49 : vector<8x128xf32>
    %51 = arith.negf %50 : vector<8x128xf32>
    %52 = math.exp %51 : vector<8x128xf32>
    %cst_21 = arith.constant 1.000000e+00 : f32
    %53 = vector.broadcast %cst_21 : f32 to vector<8x128xf32>
    %54 = arith.addf %53, %52 : vector<8x128xf32>
    %55 = arith.divf %53, %54 : vector<8x128xf32>
    %56 = vector.extract_strided_slice %47 {offsets = [0, 128], sizes = [8, 128], strides = [1, 1]} : vector<8x384xf32> to vector<8x128xf32>
    %57 = vector.extract_strided_slice %46 {offsets = [0, 128], sizes = [8, 128], strides = [1, 1]} : vector<8x384xf32> to vector<8x128xf32>
    %58 = arith.addf %56, %57 : vector<8x128xf32>
    %59 = arith.negf %58 : vector<8x128xf32>
    %60 = math.exp %59 : vector<8x128xf32>
    %cst_22 = arith.constant 1.000000e+00 : f32
    %61 = vector.broadcast %cst_22 : f32 to vector<8x128xf32>
    %62 = arith.addf %61, %60 : vector<8x128xf32>
    %63 = arith.divf %61, %62 : vector<8x128xf32>
    %64 = vector.extract_strided_slice %47 {offsets = [0, 256], sizes = [8, 128], strides = [1, 1]} : vector<8x384xf32> to vector<8x128xf32>
    %65 = vector.extract_strided_slice %46 {offsets = [0, 256], sizes = [8, 128], strides = [1, 1]} : vector<8x384xf32> to vector<8x128xf32>
    %66 = vector.broadcast %11 : vector<1x128xf32> to vector<8x128xf32>
    %67 = arith.addf %65, %66 : vector<8x128xf32>
    %68 = arith.mulf %55, %67 : vector<8x128xf32>
    %69 = arith.addf %64, %68 : vector<8x128xf32>
    %70 = math.tanh %69 : vector<8x128xf32>
    %cst_23 = arith.constant 1.000000e+00 : f32
    %71 = vector.broadcast %cst_23 : f32 to vector<8x128xf32>
    %72 = arith.subf %71, %63 : vector<8x128xf32>
    %73 = arith.mulf %72, %70 : vector<8x128xf32>
    %74 = arith.mulf %63, %42 : vector<8x128xf32>
    %75 = arith.addf %73, %74 : vector<8x128xf32>
    %c1 = arith.constant 1 : index
    %c0_24 = arith.constant 0 : index
    %c0_25 = arith.constant 0 : index
    %76 = vector.load %arg6[%c1, %c0_24, %c0_25] : memref<8x8x128xf32, #tpu.memory_space<vmem>>, vector<1x8x128xf32>
    %77 = vector.shape_cast %76 : vector<1x8x128xf32> to vector<8x128xf32>
    %78 = vector.shape_cast %75 : vector<8x128xf32> to vector<1x8x128xf32>
    tpu.vector_store %arg6[%c1, %c0_24, %c0_25], %78 {strides = array<i32>} : memref<8x8x128xf32, #tpu.memory_space<vmem>>, vector<1x8x128xf32>,
    %cst_26 = arith.constant dense<0.000000e+00> : vector<8x384xf32>
    %79 = tpu.matmul %75, %10, %cst_26 {dimension_numbers = #tpu.dot_dimension_numbers<[1], [0], [0], [1], [0, 0, 1, 1], [], []>} : vector<8x128xf32>, vector<128x384xf32>, vector<8x384xf32> -> vector<8x384xf32>
    %80 = vector.extract_strided_slice %9 {offsets = [16, 0], sizes = [8, 384], strides = [1, 1]} : vector<64x384xf32> to vector<8x384xf32>
    %81 = vector.extract_strided_slice %80 {offsets = [0, 0], sizes = [8, 128], strides = [1, 1]} : vector<8x384xf32> to vector<8x128xf32>
    %82 = vector.extract_strided_slice %79 {offsets = [0, 0], sizes = [8, 128], strides = [1, 1]} : vector<8x384xf32> to vector<8x128xf32>
    %83 = arith.addf %81, %82 : vector<8x128xf32>
    %84 = arith.negf %83 : vector<8x128xf32>
    %85 = math.exp %84 : vector<8x128xf32>
    %cst_27 = arith.constant 1.000000e+00 : f32
    %86 = vector.broadcast %cst_27 : f32 to vector<8x128xf32>
    %87 = arith.addf %86, %85 : vector<8x128xf32>
    %88 = arith.divf %86, %87 : vector<8x128xf32>
    %89 = vector.extract_strided_slice %80 {offsets = [0, 128], sizes = [8, 128], strides = [1, 1]} : vector<8x384xf32> to vector<8x128xf32>
    %90 = vector.extract_strided_slice %79 {offsets = [0, 128], sizes = [8, 128], strides = [1, 1]} : vector<8x384xf32> to vector<8x128xf32>
    %91 = arith.addf %89, %90 : vector<8x128xf32>
    %92 = arith.negf %91 : vector<8x128xf32>
    %93 = math.exp %92 : vector<8x128xf32>
    %cst_28 = arith.constant 1.000000e+00 : f32
    %94 = vector.broadcast %cst_28 : f32 to vector<8x128xf32>
    %95 = arith.addf %94, %93 : vector<8x128xf32>
    %96 = arith.divf %94, %95 : vector<8x128xf32>
    %97 = vector.extract_strided_slice %80 {offsets = [0, 256], sizes = [8, 128], strides = [1, 1]} : vector<8x384xf32> to vector<8x128xf32>
    %98 = vector.extract_strided_slice %79 {offsets = [0, 256], sizes = [8, 128], strides = [1, 1]} : vector<8x384xf32> to vector<8x128xf32>
    %99 = vector.broadcast %11 : vector<1x128xf32> to vector<8x128xf32>
    %100 = arith.addf %98, %99 : vector<8x128xf32>
    %101 = arith.mulf %88, %100 : vector<8x128xf32>
    %102 = arith.addf %97, %101 : vector<8x128xf32>
    %103 = math.tanh %102 : vector<8x128xf32>
    %cst_29 = arith.constant 1.000000e+00 : f32
    %104 = vector.broadcast %cst_29 : f32 to vector<8x128xf32>
    %105 = arith.subf %104, %96 : vector<8x128xf32>
    %106 = arith.mulf %105, %103 : vector<8x128xf32>
    %107 = arith.mulf %96, %75 : vector<8x128xf32>
    %108 = arith.addf %106, %107 : vector<8x128xf32>
    %c2 = arith.constant 2 : index
    %c0_30 = arith.constant 0 : index
    %c0_31 = arith.constant 0 : index
    %109 = vector.load %arg6[%c2, %c0_30, %c0_31] : memref<8x8x128xf32, #tpu.memory_space<vmem>>, vector<1x8x128xf32>
    %110 = vector.shape_cast %109 : vector<1x8x128xf32> to vector<8x128xf32>
    %111 = vector.shape_cast %108 : vector<8x128xf32> to vector<1x8x128xf32>
    tpu.vector_store %arg6[%c2, %c0_30, %c0_31], %111 {strides = array<i32>} : memref<8x8x128xf32, #tpu.memory_space<vmem>>, vector<1x8x128xf32>,
    %cst_32 = arith.constant dense<0.000000e+00> : vector<8x384xf32>
    %112 = tpu.matmul %108, %10, %cst_32 {dimension_numbers = #tpu.dot_dimension_numbers<[1], [0], [0], [1], [0, 0, 1, 1], [], []>} : vector<8x128xf32>, vector<128x384xf32>, vector<8x384xf32> -> vector<8x384xf32>
    %113 = vector.extract_strided_slice %9 {offsets = [24, 0], sizes = [8, 384], strides = [1, 1]} : vector<64x384xf32> to vector<8x384xf32>
    %114 = vector.extract_strided_slice %113 {offsets = [0, 0], sizes = [8, 128], strides = [1, 1]} : vector<8x384xf32> to vector<8x128xf32>
    %115 = vector.extract_strided_slice %112 {offsets = [0, 0], sizes = [8, 128], strides = [1, 1]} : vector<8x384xf32> to vector<8x128xf32>
    %116 = arith.addf %114, %115 : vector<8x128xf32>
    %117 = arith.negf %116 : vector<8x128xf32>
    %118 = math.exp %117 : vector<8x128xf32>
    %cst_33 = arith.constant 1.000000e+00 : f32
    %119 = vector.broadcast %cst_33 : f32 to vector<8x128xf32>
    %120 = arith.addf %119, %118 : vector<8x128xf32>
    %121 = arith.divf %119, %120 : vector<8x128xf32>
    %122 = vector.extract_strided_slice %113 {offsets = [0, 128], sizes = [8, 128], strides = [1, 1]} : vector<8x384xf32> to vector<8x128xf32>
    %123 = vector.extract_strided_slice %112 {offsets = [0, 128], sizes = [8, 128], strides = [1, 1]} : vector<8x384xf32> to vector<8x128xf32>
    %124 = arith.addf %122, %123 : vector<8x128xf32>
    %125 = arith.negf %124 : vector<8x128xf32>
    %126 = math.exp %125 : vector<8x128xf32>
    %cst_34 = arith.constant 1.000000e+00 : f32
    %127 = vector.broadcast %cst_34 : f32 to vector<8x128xf32>
    %128 = arith.addf %127, %126 : vector<8x128xf32>
    %129 = arith.divf %127, %128 : vector<8x128xf32>
    %130 = vector.extract_strided_slice %113 {offsets = [0, 256], sizes = [8, 128], strides = [1, 1]} : vector<8x384xf32> to vector<8x128xf32>
    %131 = vector.extract_strided_slice %112 {offsets = [0, 256], sizes = [8, 128], strides = [1, 1]} : vector<8x384xf32> to vector<8x128xf32>
    %132 = vector.broadcast %11 : vector<1x128xf32> to vector<8x128xf32>
    %133 = arith.addf %131, %132 : vector<8x128xf32>
    %134 = arith.mulf %121, %133 : vector<8x128xf32>
    %135 = arith.addf %130, %134 : vector<8x128xf32>
    %136 = math.tanh %135 : vector<8x128xf32>
    %cst_35 = arith.constant 1.000000e+00 : f32
    %137 = vector.broadcast %cst_35 : f32 to vector<8x128xf32>
    %138 = arith.subf %137, %129 : vector<8x128xf32>
    %139 = arith.mulf %138, %136 : vector<8x128xf32>
    %140 = arith.mulf %129, %108 : vector<8x128xf32>
    %141 = arith.addf %139, %140 : vector<8x128xf32>
    %c3 = arith.constant 3 : index
    %c0_36 = arith.constant 0 : index
    %c0_37 = arith.constant 0 : index
    %142 = vector.load %arg6[%c3, %c0_36, %c0_37] : memref<8x8x128xf32, #tpu.memory_space<vmem>>, vector<1x8x128xf32>
    %143 = vector.shape_cast %142 : vector<1x8x128xf32> to vector<8x128xf32>
    %144 = vector.shape_cast %141 : vector<8x128xf32> to vector<1x8x128xf32>
    tpu.vector_store %arg6[%c3, %c0_36, %c0_37], %144 {strides = array<i32>} : memref<8x8x128xf32, #tpu.memory_space<vmem>>, vector<1x8x128xf32>,
    %cst_38 = arith.constant dense<0.000000e+00> : vector<8x384xf32>
    %145 = tpu.matmul %141, %10, %cst_38 {dimension_numbers = #tpu.dot_dimension_numbers<[1], [0], [0], [1], [0, 0, 1, 1], [], []>} : vector<8x128xf32>, vector<128x384xf32>, vector<8x384xf32> -> vector<8x384xf32>
    %146 = vector.extract_strided_slice %9 {offsets = [32, 0], sizes = [8, 384], strides = [1, 1]} : vector<64x384xf32> to vector<8x384xf32>
    %147 = vector.extract_strided_slice %146 {offsets = [0, 0], sizes = [8, 128], strides = [1, 1]} : vector<8x384xf32> to vector<8x128xf32>
    %148 = vector.extract_strided_slice %145 {offsets = [0, 0], sizes = [8, 128], strides = [1, 1]} : vector<8x384xf32> to vector<8x128xf32>
    %149 = arith.addf %147, %148 : vector<8x128xf32>
    %150 = arith.negf %149 : vector<8x128xf32>
    %151 = math.exp %150 : vector<8x128xf32>
    %cst_39 = arith.constant 1.000000e+00 : f32
    %152 = vector.broadcast %cst_39 : f32 to vector<8x128xf32>
    %153 = arith.addf %152, %151 : vector<8x128xf32>
    %154 = arith.divf %152, %153 : vector<8x128xf32>
    %155 = vector.extract_strided_slice %146 {offsets = [0, 128], sizes = [8, 128], strides = [1, 1]} : vector<8x384xf32> to vector<8x128xf32>
    %156 = vector.extract_strided_slice %145 {offsets = [0, 128], sizes = [8, 128], strides = [1, 1]} : vector<8x384xf32> to vector<8x128xf32>
    %157 = arith.addf %155, %156 : vector<8x128xf32>
    %158 = arith.negf %157 : vector<8x128xf32>
    %159 = math.exp %158 : vector<8x128xf32>
    %cst_40 = arith.constant 1.000000e+00 : f32
    %160 = vector.broadcast %cst_40 : f32 to vector<8x128xf32>
    %161 = arith.addf %160, %159 : vector<8x128xf32>
    %162 = arith.divf %160, %161 : vector<8x128xf32>
    %163 = vector.extract_strided_slice %146 {offsets = [0, 256], sizes = [8, 128], strides = [1, 1]} : vector<8x384xf32> to vector<8x128xf32>
    %164 = vector.extract_strided_slice %145 {offsets = [0, 256], sizes = [8, 128], strides = [1, 1]} : vector<8x384xf32> to vector<8x128xf32>
    %165 = vector.broadcast %11 : vector<1x128xf32> to vector<8x128xf32>
    %166 = arith.addf %164, %165 : vector<8x128xf32>
    %167 = arith.mulf %154, %166 : vector<8x128xf32>
    %168 = arith.addf %163, %167 : vector<8x128xf32>
    %169 = math.tanh %168 : vector<8x128xf32>
    %cst_41 = arith.constant 1.000000e+00 : f32
    %170 = vector.broadcast %cst_41 : f32 to vector<8x128xf32>
    %171 = arith.subf %170, %162 : vector<8x128xf32>
    %172 = arith.mulf %171, %169 : vector<8x128xf32>
    %173 = arith.mulf %162, %141 : vector<8x128xf32>
    %174 = arith.addf %172, %173 : vector<8x128xf32>
    %c4 = arith.constant 4 : index
    %c0_42 = arith.constant 0 : index
    %c0_43 = arith.constant 0 : index
    %175 = vector.load %arg6[%c4, %c0_42, %c0_43] : memref<8x8x128xf32, #tpu.memory_space<vmem>>, vector<1x8x128xf32>
    %176 = vector.shape_cast %175 : vector<1x8x128xf32> to vector<8x128xf32>
    %177 = vector.shape_cast %174 : vector<8x128xf32> to vector<1x8x128xf32>
    tpu.vector_store %arg6[%c4, %c0_42, %c0_43], %177 {strides = array<i32>} : memref<8x8x128xf32, #tpu.memory_space<vmem>>, vector<1x8x128xf32>,
    %cst_44 = arith.constant dense<0.000000e+00> : vector<8x384xf32>
    %178 = tpu.matmul %174, %10, %cst_44 {dimension_numbers = #tpu.dot_dimension_numbers<[1], [0], [0], [1], [0, 0, 1, 1], [], []>} : vector<8x128xf32>, vector<128x384xf32>, vector<8x384xf32> -> vector<8x384xf32>
    %179 = vector.extract_strided_slice %9 {offsets = [40, 0], sizes = [8, 384], strides = [1, 1]} : vector<64x384xf32> to vector<8x384xf32>
    %180 = vector.extract_strided_slice %179 {offsets = [0, 0], sizes = [8, 128], strides = [1, 1]} : vector<8x384xf32> to vector<8x128xf32>
    %181 = vector.extract_strided_slice %178 {offsets = [0, 0], sizes = [8, 128], strides = [1, 1]} : vector<8x384xf32> to vector<8x128xf32>
    %182 = arith.addf %180, %181 : vector<8x128xf32>
    %183 = arith.negf %182 : vector<8x128xf32>
    %184 = math.exp %183 : vector<8x128xf32>
    %cst_45 = arith.constant 1.000000e+00 : f32
    %185 = vector.broadcast %cst_45 : f32 to vector<8x128xf32>
    %186 = arith.addf %185, %184 : vector<8x128xf32>
    %187 = arith.divf %185, %186 : vector<8x128xf32>
    %188 = vector.extract_strided_slice %179 {offsets = [0, 128], sizes = [8, 128], strides = [1, 1]} : vector<8x384xf32> to vector<8x128xf32>
    %189 = vector.extract_strided_slice %178 {offsets = [0, 128], sizes = [8, 128], strides = [1, 1]} : vector<8x384xf32> to vector<8x128xf32>
    %190 = arith.addf %188, %189 : vector<8x128xf32>
    %191 = arith.negf %190 : vector<8x128xf32>
    %192 = math.exp %191 : vector<8x128xf32>
    %cst_46 = arith.constant 1.000000e+00 : f32
    %193 = vector.broadcast %cst_46 : f32 to vector<8x128xf32>
    %194 = arith.addf %193, %192 : vector<8x128xf32>
    %195 = arith.divf %193, %194 : vector<8x128xf32>
    %196 = vector.extract_strided_slice %179 {offsets = [0, 256], sizes = [8, 128], strides = [1, 1]} : vector<8x384xf32> to vector<8x128xf32>
    %197 = vector.extract_strided_slice %178 {offsets = [0, 256], sizes = [8, 128], strides = [1, 1]} : vector<8x384xf32> to vector<8x128xf32>
    %198 = vector.broadcast %11 : vector<1x128xf32> to vector<8x128xf32>
    %199 = arith.addf %197, %198 : vector<8x128xf32>
    %200 = arith.mulf %187, %199 : vector<8x128xf32>
    %201 = arith.addf %196, %200 : vector<8x128xf32>
    %202 = math.tanh %201 : vector<8x128xf32>
    %cst_47 = arith.constant 1.000000e+00 : f32
    %203 = vector.broadcast %cst_47 : f32 to vector<8x128xf32>
    %204 = arith.subf %203, %195 : vector<8x128xf32>
    %205 = arith.mulf %204, %202 : vector<8x128xf32>
    %206 = arith.mulf %195, %174 : vector<8x128xf32>
    %207 = arith.addf %205, %206 : vector<8x128xf32>
    %c5 = arith.constant 5 : index
    %c0_48 = arith.constant 0 : index
    %c0_49 = arith.constant 0 : index
    %208 = vector.load %arg6[%c5, %c0_48, %c0_49] : memref<8x8x128xf32, #tpu.memory_space<vmem>>, vector<1x8x128xf32>
    %209 = vector.shape_cast %208 : vector<1x8x128xf32> to vector<8x128xf32>
    %210 = vector.shape_cast %207 : vector<8x128xf32> to vector<1x8x128xf32>
    tpu.vector_store %arg6[%c5, %c0_48, %c0_49], %210 {strides = array<i32>} : memref<8x8x128xf32, #tpu.memory_space<vmem>>, vector<1x8x128xf32>,
    %cst_50 = arith.constant dense<0.000000e+00> : vector<8x384xf32>
    %211 = tpu.matmul %207, %10, %cst_50 {dimension_numbers = #tpu.dot_dimension_numbers<[1], [0], [0], [1], [0, 0, 1, 1], [], []>} : vector<8x128xf32>, vector<128x384xf32>, vector<8x384xf32> -> vector<8x384xf32>
    %212 = vector.extract_strided_slice %9 {offsets = [48, 0], sizes = [8, 384], strides = [1, 1]} : vector<64x384xf32> to vector<8x384xf32>
    %213 = vector.extract_strided_slice %212 {offsets = [0, 0], sizes = [8, 128], strides = [1, 1]} : vector<8x384xf32> to vector<8x128xf32>
    %214 = vector.extract_strided_slice %211 {offsets = [0, 0], sizes = [8, 128], strides = [1, 1]} : vector<8x384xf32> to vector<8x128xf32>
    %215 = arith.addf %213, %214 : vector<8x128xf32>
    %216 = arith.negf %215 : vector<8x128xf32>
    %217 = math.exp %216 : vector<8x128xf32>
    %cst_51 = arith.constant 1.000000e+00 : f32
    %218 = vector.broadcast %cst_51 : f32 to vector<8x128xf32>
    %219 = arith.addf %218, %217 : vector<8x128xf32>
    %220 = arith.divf %218, %219 : vector<8x128xf32>
    %221 = vector.extract_strided_slice %212 {offsets = [0, 128], sizes = [8, 128], strides = [1, 1]} : vector<8x384xf32> to vector<8x128xf32>
    %222 = vector.extract_strided_slice %211 {offsets = [0, 128], sizes = [8, 128], strides = [1, 1]} : vector<8x384xf32> to vector<8x128xf32>
    %223 = arith.addf %221, %222 : vector<8x128xf32>
    %224 = arith.negf %223 : vector<8x128xf32>
    %225 = math.exp %224 : vector<8x128xf32>
    %cst_52 = arith.constant 1.000000e+00 : f32
    %226 = vector.broadcast %cst_52 : f32 to vector<8x128xf32>
    %227 = arith.addf %226, %225 : vector<8x128xf32>
    %228 = arith.divf %226, %227 : vector<8x128xf32>
    %229 = vector.extract_strided_slice %212 {offsets = [0, 256], sizes = [8, 128], strides = [1, 1]} : vector<8x384xf32> to vector<8x128xf32>
    %230 = vector.extract_strided_slice %211 {offsets = [0, 256], sizes = [8, 128], strides = [1, 1]} : vector<8x384xf32> to vector<8x128xf32>
    %231 = vector.broadcast %11 : vector<1x128xf32> to vector<8x128xf32>
    %232 = arith.addf %230, %231 : vector<8x128xf32>
    %233 = arith.mulf %220, %232 : vector<8x128xf32>
    %234 = arith.addf %229, %233 : vector<8x128xf32>
    %235 = math.tanh %234 : vector<8x128xf32>
    %cst_53 = arith.constant 1.000000e+00 : f32
    %236 = vector.broadcast %cst_53 : f32 to vector<8x128xf32>
    %237 = arith.subf %236, %228 : vector<8x128xf32>
    %238 = arith.mulf %237, %235 : vector<8x128xf32>
    %239 = arith.mulf %228, %207 : vector<8x128xf32>
    %240 = arith.addf %238, %239 : vector<8x128xf32>
    %c6 = arith.constant 6 : index
    %c0_54 = arith.constant 0 : index
    %c0_55 = arith.constant 0 : index
    %241 = vector.load %arg6[%c6, %c0_54, %c0_55] : memref<8x8x128xf32, #tpu.memory_space<vmem>>, vector<1x8x128xf32>
    %242 = vector.shape_cast %241 : vector<1x8x128xf32> to vector<8x128xf32>
    %243 = vector.shape_cast %240 : vector<8x128xf32> to vector<1x8x128xf32>
    tpu.vector_store %arg6[%c6, %c0_54, %c0_55], %243 {strides = array<i32>} : memref<8x8x128xf32, #tpu.memory_space<vmem>>, vector<1x8x128xf32>,
    %cst_56 = arith.constant dense<0.000000e+00> : vector<8x384xf32>
    %244 = tpu.matmul %240, %10, %cst_56 {dimension_numbers = #tpu.dot_dimension_numbers<[1], [0], [0], [1], [0, 0, 1, 1], [], []>} : vector<8x128xf32>, vector<128x384xf32>, vector<8x384xf32> -> vector<8x384xf32>
    %245 = vector.extract_strided_slice %9 {offsets = [56, 0], sizes = [8, 384], strides = [1, 1]} : vector<64x384xf32> to vector<8x384xf32>
    %246 = vector.extract_strided_slice %245 {offsets = [0, 0], sizes = [8, 128], strides = [1, 1]} : vector<8x384xf32> to vector<8x128xf32>
    %247 = vector.extract_strided_slice %244 {offsets = [0, 0], sizes = [8, 128], strides = [1, 1]} : vector<8x384xf32> to vector<8x128xf32>
    %248 = arith.addf %246, %247 : vector<8x128xf32>
    %249 = arith.negf %248 : vector<8x128xf32>
    %250 = math.exp %249 : vector<8x128xf32>
    %cst_57 = arith.constant 1.000000e+00 : f32
    %251 = vector.broadcast %cst_57 : f32 to vector<8x128xf32>
    %252 = arith.addf %251, %250 : vector<8x128xf32>
    %253 = arith.divf %251, %252 : vector<8x128xf32>
    %254 = vector.extract_strided_slice %245 {offsets = [0, 128], sizes = [8, 128], strides = [1, 1]} : vector<8x384xf32> to vector<8x128xf32>
    %255 = vector.extract_strided_slice %244 {offsets = [0, 128], sizes = [8, 128], strides = [1, 1]} : vector<8x384xf32> to vector<8x128xf32>
    %256 = arith.addf %254, %255 : vector<8x128xf32>
    %257 = arith.negf %256 : vector<8x128xf32>
    %258 = math.exp %257 : vector<8x128xf32>
    %cst_58 = arith.constant 1.000000e+00 : f32
    %259 = vector.broadcast %cst_58 : f32 to vector<8x128xf32>
    %260 = arith.addf %259, %258 : vector<8x128xf32>
    %261 = arith.divf %259, %260 : vector<8x128xf32>
    %262 = vector.extract_strided_slice %245 {offsets = [0, 256], sizes = [8, 128], strides = [1, 1]} : vector<8x384xf32> to vector<8x128xf32>
    %263 = vector.extract_strided_slice %244 {offsets = [0, 256], sizes = [8, 128], strides = [1, 1]} : vector<8x384xf32> to vector<8x128xf32>
    %264 = vector.broadcast %11 : vector<1x128xf32> to vector<8x128xf32>
    %265 = arith.addf %263, %264 : vector<8x128xf32>
    %266 = arith.mulf %253, %265 : vector<8x128xf32>
    %267 = arith.addf %262, %266 : vector<8x128xf32>
    %268 = math.tanh %267 : vector<8x128xf32>
    %cst_59 = arith.constant 1.000000e+00 : f32
    %269 = vector.broadcast %cst_59 : f32 to vector<8x128xf32>
    %270 = arith.subf %269, %261 : vector<8x128xf32>
    %271 = arith.mulf %270, %268 : vector<8x128xf32>
    %272 = arith.mulf %261, %240 : vector<8x128xf32>
    %273 = arith.addf %271, %272 : vector<8x128xf32>
    %c7 = arith.constant 7 : index
    %c0_60 = arith.constant 0 : index
    %c0_61 = arith.constant 0 : index
    %274 = vector.load %arg6[%c7, %c0_60, %c0_61] : memref<8x8x128xf32, #tpu.memory_space<vmem>>, vector<1x8x128xf32>
    %275 = vector.shape_cast %274 : vector<1x8x128xf32> to vector<8x128xf32>
    %276 = vector.shape_cast %273 : vector<8x128xf32> to vector<1x8x128xf32>
    tpu.vector_store %arg6[%c7, %c0_60, %c0_61], %276 {strides = array<i32>} : memref<8x8x128xf32, #tpu.memory_space<vmem>>, vector<1x8x128xf32>,
    %c0_62 = arith.constant 0 : index
    %c0_63 = arith.constant 0 : index
    %277 = vector.load %arg7[%c0_62, %c0_63] : memref<8x128xf32, #tpu.memory_space<vmem>>, vector<8x128xf32>
    tpu.vector_store %arg7[%c0_62, %c0_63], %273 {strides = array<i32>} : memref<8x128xf32, #tpu.memory_space<vmem>>, vector<8x128xf32>,
    return
  }
  func.func @transform_0(%arg0: i32) -> (i32, i32, i32) {
    %c0_i32 = arith.constant 0 : i32
    %c0_i32_0 = arith.constant 0 : i32
    %c0_i32_1 = arith.constant 0 : i32
    return %arg0, %c0_i32, %c0_i32_0 : i32, i32, i32
  }
  func.func @transform_1(%arg0: i32) -> (i32, i32) {
    %c0_i32 = arith.constant 0 : i32
    %c0_i32_0 = arith.constant 0 : i32
    %c0_i32_1 = arith.constant 0 : i32
    return %c0_i32, %c0_i32_0 : i32, i32
  }
  func.func @transform_2(%arg0: i32) -> (i32, i32) {
    %c0_i32 = arith.constant 0 : i32
    %c0_i32_0 = arith.constant 0 : i32
    %c0_i32_1 = arith.constant 0 : i32
    return %c0_i32, %c0_i32_0 : i32, i32
  }
  func.func @transform_3(%arg0: i32) -> (i32, i32) {
    %c0_i32 = arith.constant 0 : i32
    %c0_i32_0 = arith.constant 0 : i32
    %c0_i32_1 = arith.constant 0 : i32
    return %c0_i32, %c0_i32_0 : i32, i32
  }
  func.func @transform_4(%arg0: i32) -> (i32, i32) {
    %c0_i32 = arith.constant 0 : i32
    %c0_i32_0 = arith.constant 0 : i32
    %c0_i32_1 = arith.constant 0 : i32
    return %c0_i32, %c0_i32_0 : i32, i32
  }
  func.func @transform_5(%arg0: i32) -> (i32, i32, i32) {
    %c0_i32 = arith.constant 0 : i32
    %c0_i32_0 = arith.constant 0 : i32
    %c0_i32_1 = arith.constant 0 : i32
    return %arg0, %c0_i32, %c0_i32_0 : i32, i32, i32
  }
}

</mosaic_0001>

<bundles_post_ra>
// kernel: tpu_custom_call.1
= control target key start
LH: loop header
LB: loop body
LE: loop exit
PB: predicated region body
PF: predicated region fallthrough
CT: control target
= control target key end

     0   :  { %10 = vsyncpa [#allocation4], 0  ;;  %s4174_s0 = inlined_call_operand.hbm [shape: f32[16,8,128], index: 0, kind: input, shape index: {}]   ;;  %s4175_s1 = inlined_call_operand.hbm [shape: f32[128,384], index: 1, kind: input, shape index: {}]   ;;  %s4176_s2 = inlined_call_operand.hbm [shape: f32[128,384], index: 2, kind: input, shape index: {}]   ;;  %s4177_s3 = inlined_call_operand.vmem [shape: f32[1,384], index: 3, kind: input, shape index: {}]   ;;  %s4178_s4 = inlined_call_operand.vmem [shape: f32[1,128], index: 4, kind: input, shape index: {}]   ;;  %s4179_s5 = inlined_call_operand.hbm [shape: f32[16,8,128], index: 5, kind: output, shape index: {}]  }
   0x1   :  { %12 = vsyncpa [#allocation4 + $0x1], 0 }
   0x2   :  { %13 = vsyncpa [#allocation7], 0 }
   0x3   :  { %14 = vsyncpa [#allocation5], 0 }
   0x4   :  { %16 = vsyncpa [#allocation5 + $0x1], 0  ;;  %s3484_s18 = smov 0   ;;  %s3486_s19 = smov 0  }
   0x5   :  { %s3488_s20 = smov 0   ;;  %s3490_s21 = smov 0  }
   0x6 LB: > { %s3505_s22 = sadd.s32 4294967295, %s3438_s21   ;;  %s2052_s23 = sadd.s32 4294967294, %s3438_s21   ;;  %s3438_s21 = sphi %s3490_s21, %s4200_s21   ;;  %s3434_s20 = sphi %s3488_s20, %s4199_s20   ;;  %s3430_s19 = sphi %s3486_s19, %s4198_s19   ;;  %s3426_s18 = sphi %s3484_s18, %s4197_s18  }
   0x7   : > { %p42_p0 = scmp.ne.s32.totalorder %s3430_s19, %s3426_s18  ;;  %p4180_p1 = scmp.eq.s32.totalorder %s3505_s22, 0 }
   0x8   : > { %p156_p3 = scmp.eq.s32.totalorder %s2052_s23, 1  ;;  %p2053_p5 = scmp.ge.s32.totalorder %s3438_s21, 1 }
   0x9   : > { %p3514_p4 = por %p4180_p1, %p42_p0  ;;  %p163_p7 = scmp.lt.s32.totalorder %s3438_s21, 3 }
   0xa   : > { %p3519_p6 = por %p156_p3, %p42_p0  ;;  %s3440_s27 = smov [#allocation6]  }
   0xb   : > { %s4183_s24 = scalar_select %p3514_p4, 1, 0 }
   0xc   : > { %s4184_s25 = scalar_select %p3519_p6, 1, 0 }
   0xd   : > { %p3525_p9 = pnand %p2053_p5, %p163_p7  ;;  %s175_s28 = sshll.u32 %s3440_s27, 4  ;;  %s3529_s28 = int_to_ptr.vmem [resolvable:$true] %s175_s28 }
   0xe   : > { %s3441_s30 = smov [#allocation8]   ;;  %s3282_s9 = scalar_lea.hbm %s4175_s1, 6144 }
   0xf   : > { %p3137_p10 = pneg %p3525_p9  ;;  %s188_s6 = sshll.u32 %s3441_s30, 4  ;;  %s3540_s6 = int_to_ptr.vmem [resolvable:$true] %s188_s6 }
  0x10   : > { %p3283_p13 = scmp.ne.s32.totalorder %s4175_s1, %s3282_s9  ;;  %p3289_p7 = scmp.lt.u32.totalorder %s3282_s9, %s4175_s1 }
  0x11   : > { %p3536_p12 = pnand %p3137_p10, %p4180_p1 }
  0x13   : > { %p3284_p0 = pneg %p3536_p12 }
  0x15   : > { %p3285_p3 = pnand %p3284_p0, %p3283_p13 }
  0x17   : > { %p3286_p5 = pneg %p3285_p3 }
  0x19   : > { %p3291_p10 = pnand %p3289_p7, %p3286_p5 }
  0x1b   : > { %3294 = shalt.err (!%p3291_p10)
}
  0x1c   : > { %s3295_s14 = scalar_lea.vmem %s3529_s28, 6144  ;;  %p3303_p2 = scmp.lt.s32.totalorder %s3529_s28, %s3529_s28 }
  0x1d   : > { %p3296_p11 = scmp.ne.s32.totalorder %s3529_s28, %s3295_s14  ;;  %p3304_p13 = scmp.lt.s32.totalorder %s3295_s14, %s3295_s14 }
  0x1f   : > { %p3298_p8 = pnand %p3296_p11, %p3284_p0  ;;  %p3305_p3 = por %p3304_p13, %p3303_p2 }
  0x21   : > { %p3299_p1 = pneg %p3298_p8 }
  0x23   : > { %p3306_p6 = pnand %p3305_p3, %p3299_p1 }
  0x25   : > { %3309 = shalt.err (!%p3306_p6)
}
  0x26   : > { %s3442_s15 = smov 384   ;;  %s3443_s16 = smov 24  }
  0x27   : > { %3140 = dma.hbm_to_vmem [thread:$0]  (!%p3536_p12), %s4175_s1, 6144, %s3529_s28, [#allocation7], %s3442_s15, %s3442_s15, %s3443_s16  }
  0x28   : > { %s3310_s7 = scalar_lea.hbm %s4176_s2, 6144 }
  0x29   : > { %p3311_p2 = scmp.ne.s32.totalorder %s4176_s2, %s3310_s7  ;;  %p3317_p8 = scmp.lt.u32.totalorder %s3310_s7, %s4176_s2 }
  0x2b   : > { %p3313_p1 = pnand %p3311_p2, %p3284_p0 }
  0x2d   : > { %p3314_p6 = pneg %p3313_p1 }
  0x2f   : > { %p3319_p11 = pnand %p3317_p8, %p3314_p6 }
  0x31   : > { %3322 = shalt.err (!%p3319_p11)
}
  0x32   : > { %s3323_s28 = scalar_lea.vmem %s3540_s6, 6144  ;;  %p3331_p13 = scmp.lt.s32.totalorder %s3540_s6, %s3540_s6 }
  0x33   : > { %p3324_p5 = scmp.ne.s32.totalorder %s3540_s6, %s3323_s28  ;;  %p3332_p3 = scmp.lt.s32.totalorder %s3323_s28, %s3323_s28 }
  0x35   : > { %p3326_p7 = pnand %p3324_p5, %p3284_p0  ;;  %p3333_p2 = por %p3332_p3, %p3331_p13 }
  0x37   : > { %p3327_p10 = pneg %p3326_p7 }
  0x39   : > { %p3334_p1 = pnand %p3333_p2, %p3327_p10 }
  0x3b   : > { %3337 = shalt.err (!%p3334_p1)
}
  0x3c   : > { %3143 = dma.hbm_to_vmem [thread:$0]  (!%p3536_p12), %s4176_s2, 6144, %s3540_s6, [#allocation7], %s3442_s15, %s3442_s15, %s3443_s16  }
  0x3d   : > { %s3595_s14 = sadd.s32 1, %s3438_s21   ;;  %s29_s29 = sadd.s32 1, %s3434_s20 }
  0x3e   : > { %s26_s17 = ssub.s32 %s3438_s21, %s3595_s14  ;;  %p36_p0 = scmp.ne.s32.totalorder %s3434_s20, %s3430_s19 }
  0x3f   : > { %p27_p6 = scmp.eq.s32.totalorder %s26_s17, 0  ;;  %p37_p8 = scmp.eq.s32.totalorder %s3438_s21, 0 }
  0x40   : > { %p4187_p11 = scmp.eq.s32.totalorder %s3505_s22, 1  ;;  %p3154_p7 = scmp.lt.s32.totalorder %s3438_s21, 2 }
  0x41   : > { %s3611_s27 = scalar_select %p27_p6, %s3434_s20, %s29_s29  }
  0x42   : > { %p3605_p5 = por %p4187_p11, %p36_p0  ;;  %p38_p10 = por %p37_p8, %p36_p0 }
  0x43   : > { %s208_s30 = sand.u32 1, %s3434_s20   ;;  %s2095_s6 = sshll.u32 %s3438_s21, 10 }
  0x44   : > { %s4188_s23 = scalar_select %p3605_p5, 1, 0 }
  0x45   : > { %s2057_s7 = sshll.u32 %s208_s30, 6  ;;  %s3618_s8 = scalar_lea.hbm %s4174_s0, %s2095_s6 }
  0x46   : > { %s212_s9 = scalar_lea.vmem [#allocation3], %s2057_s7  ;;  %p3622_p12 = pnand %p3154_p7, %p38_p10 }
  0x47   : > { %s219_s10 = sshll.u32 %s212_s9, 4  ;;  %s3626_s28 = scalar_lea.sflag [#allocation4], %s208_s30  ;;  %s3620_s10 = int_to_ptr.vmem [resolvable:$true] %s219_s10 }
  0x48   : > { %s3338_s12 = scalar_lea.hbm %s3618_s8, 1024  ;;  %p3340_p3 = pneg %p3622_p12 }
  0x49   : > { %p3339_p13 = scmp.ne.s32.totalorder %s3618_s8, %s3338_s12  ;;  %s3343_s17 = scalar_lea.hbm %s4174_s0, 2048 }
  0x4a   : > { %p3344_p0 = scmp.lt.u32.totalorder %s3618_s8, %s4174_s0  ;;  %p3345_p6 = scmp.lt.u32.totalorder %s3343_s17, %s3338_s12 }
  0x4b   : > { %p3341_p2 = pnand %p3340_p3, %p3339_p13  ;;  %p3347_p11 = scmp.lt.u32.totalorder %s3338_s12, %s3618_s8 }
  0x4c   : > { %p3346_p8 = por %p3345_p6, %p3344_p0 }
  0x4d   : > { %p3342_p1 = pneg %p3341_p2 }
  0x4e   : > { %p3348_p7 = por %p3347_p11, %p3346_p8 }
  0x50   : > { %p3349_p10 = pnand %p3348_p7, %p3342_p1 }
  0x52   : > { %3352 = shalt.err (!%p3349_p10)
}
  0x53   : > { %s3353_s30 = scalar_lea.vmem %s3620_s10, 1024  ;;  %s3444_s15 = smov [#allocation3]  }
  0x54   : > { %p3354_p13 = scmp.ne.s32.totalorder %s3620_s10, %s3353_s30  ;;  %s3358_s16 = sshll.u32 %s3444_s15, 4  ;;  %s3359_s16 = int_to_ptr.vmem [resolvable:$false] %s3358_s16 }
  0x55   : > { %s3360_s9 = scalar_lea.vmem %s3359_s16, 2048  ;;  %p3361_p4 = scmp.lt.s32.totalorder %s3620_s10, %s3359_s16 }
  0x56   : > { %p3356_p2 = pnand %p3354_p13, %p3340_p3  ;;  %p3362_p0 = scmp.lt.s32.totalorder %s3360_s9, %s3353_s30 }
  0x58   : > { %p3357_p5 = pneg %p3356_p2  ;;  %p3363_p6 = por %p3362_p0, %p3361_p4 }
  0x5a   : > { %p3364_p8 = pnand %p3363_p6, %p3357_p5 }
  0x5c   : > { %3367 = shalt.err (!%p3364_p8)
}
  0x5d   : > { %s3445_s12 = smov 128   ;;  %s3446_s13 = smov 8  }
  0x5e   : > { %3147 = dma.hbm_to_vmem [thread:$0]  (!%p3622_p12), %s3618_s8, 1024, %s3620_s10, %s3626_s28, %s3445_s12, %s3445_s12, %s3446_s13  }
  0x5f   : > { %231 = sbr.rel (%p3525_p9) target bundleno = 2269 (0x8dd), region = 40  ;;  %s3657_s29 = sand.u32 (!%p3525_p9), 1, %s3430_s19  }
  0x60   : > { %s2061_s17 = sshll.u32 (!%p3525_p9), %s3657_s29, 6  ;;  %s234_s7 = scalar_lea.sflag (!%p3525_p9), [#allocation4], %s3657_s29 }
  0x61   : > { %s3661_s6 = scalar_lea.vmem (!%p3525_p9), [#allocation3], %s2061_s17  ;;  %p4190_p4 = scmp.ne.s32.totalorder (!%p3525_p9), %s4183_s24, 0 }
  0x66   : > { %3413 = dma.done.wait (%p4190_p4), %s234_s7, 1024  }
  0x67   : > { %3415 = vsyncadd (%p4190_p4), %s234_s7, 4294966272  ;;  %p4191_p5 = scmp.eq.s32.totalorder %s3505_s22, 0 }
  0x69   : > { %3417 = dma.done.wait (%p4191_p5), [#allocation7], 12288   ;;  %p4192_p9 = pmov %p4191_p5 }
  0x6a   : > { %s3671_s26 = scalar_lea.vmem [#allocation9], %s2061_s17  ;;  %p4193_p12 = scmp.ne.s32.totalorder %s3505_s22, 0 }
  0x6b   : > { %3419 = vsyncadd (%p4192_p9), [#allocation7], 4294955008  ;;  %v3447_v0 = vmov (!%p4193_p12), 0.0  }
  0x6c   : > { %277 = sbr.rel (%p4193_p12) target bundleno = 115 (0x73), region = 56  ;;  %278 = vst [vmem:[#allocation2] sm:$0xff] (!%p4193_p12), %v3447_v0 }
  0x73 PF: > { %v288_v1 = vld [vmem:[#allocation6 + $0x8] sm:$0xff]  ;;  %v291_v2 = vld [vmem:[#allocation6 + $0x20] sm:$0xff]  ;;  %v290_v5 = vld [vmem:[#allocation6 + $0x18] sm:$0xff]  ;;  %v3448_v8 = vmov 0.0   ;;  %vm3450_vm0 = vmmov 0   ;;  %s2096_s28 = sshll.u32 %s3505_s22, 10 }
  0x74   : > { %v287_v3 = vld [vmem:[#allocation6] sm:$0xff]  ;;  %v2581_v4 = vpack.c.bf16 %v291_v2, %v288_v1  ;;  %v294_v6 = vld [vmem:[#allocation6 + $0x38] sm:$0xff]  ;;  %v297_v7 = vld [vmem:[#allocation6 + $0x50] sm:$0xff]  ;;  %416 = vmatprep.mubr.f32.mxu0 %v3448_v8  ;;  %s1960_s30 = sshll.u32 %s3671_s26, 4  ;;  %s4127_s9 = scalar_lea.hbm %s4179_s5, %s2096_s28  ;;  %s4129_s30 = int_to_ptr.vmem [resolvable:$true] %s1960_s30 }
  0x75   : > { %v2583_v9 = vpack.c.bf16 %v290_v5, %v287_v3  ;;  %v2585_v10 = vpack.c.bf16 %v297_v7, %v294_v6  ;;  %v293_v11 = vld [vmem:[#allocation6 + $0x30] sm:$0xff]  ;;  %v296_v12 = vld [vmem:[#allocation6 + $0x48] sm:$0xff]  ;;  %v303_v14 = vld [vmem:[#allocation6 + $0x80] sm:$0xff]  ;;  %s1947_s12 = scalar_lea.sflag [#allocation5], %s3657_s29  ;;  %s3368_s13 = scalar_lea.vmem %s4129_s30, 1024 }
  0x76   : > { %v300_v13 = vld [vmem:[#allocation6 + $0x68] sm:$0xff]  ;;  %2582 = vmatprep.subr.bf16.mxu0 %v2581_v4  ;;  %v2587_v15 = vpack.c.bf16 %v296_v12, %v293_v11  ;;  %v299_v17 = vld [vmem:[#allocation6 + $0x60] sm:$0xff]  ;;  %v302_v18 = vld [vmem:[#allocation6 + $0x78] sm:$0xff]  ;;  %p3369_p3 = scmp.ne.s32.totalorder %s4129_s30, %s3368_s13  ;;  %p4194_p1 = scmp.ne.s32.totalorder %s4188_s23, 0 }
  0x77   : > { %2584 = vmatpush1.bf16.msra.mxu0 %v2583_v9  ;;  %v2589_v16 = vpack.c.bf16 %v303_v14, %v300_v13  ;;  %v306_v19 = vld [vmem:[#allocation6 + $0x98] sm:$0xff]  ;;  %v309_v20 = vld [vmem:[#allocation6 + $0xb0] sm:$0xff]  ;;  %v2591_v21 = vpack.c.bf16 %v302_v18, %v299_v17  ;;  %v308_v24 = vld [vmem:[#allocation6 + $0xa8] sm:$0xff]  ;;  %s3451_s22 = smov [#allocation9]  }
  0x78   : > { %2586 = vmatprep.subr.bf16.mxu0 %v2585_v10  ;;  %v305_v22 = vld [vmem:[#allocation6 + $0x90] sm:$0xff]  ;;  %v2593_v23 = vpack.c.bf16 %v309_v20, %v306_v19  ;;  %v292_v26 = vld [vmem:[#allocation6 + $0x28] sm:$0xff]  ;;  %v315_v28 = vld [vmem:[#allocation6 + $0xe0] sm:$0xff]  ;;  %p3370_p11 = pnand %p3369_p3, %p4194_p1  ;;  %s3372_s17 = sshll.u32 %s3451_s22, 4  ;;  %s3373_s17 = int_to_ptr.vmem [resolvable:$false] %s3372_s17 }
  0x79   : > { %v289_v25 = vld [vmem:[#allocation6 + $0x10] sm:$0xff]  ;;  %v312_v27 = vld [vmem:[#allocation6 + $0xc8] sm:$0xff]  ;;  %v295_v30 = vld [vmem:[#allocation6 + $0x40] sm:$0xff]  ;;  %v2595_v32 = vpack.c.bf16 %v308_v24, %v305_v22  ;;  %s3374_s7 = scalar_lea.vmem %s3373_s17, 2048  ;;  %p3375_p10 = scmp.lt.s32.totalorder %s4129_s30, %s3373_s17 }
  0x7a   : > { %v2613_v29 = vpack.c.bf16 %v292_v26, %v289_v25  ;;  %v298_v31 = vld [vmem:[#allocation6 + $0x58] sm:$0xff]  ;;  %v311_v33 = vld [vmem:[#allocation6 + $0xc0] sm:$0xff]  ;;  %v2597_v35 = vpack.c.bf16 %v315_v28, %v312_v27  ;;  %v301_v38 = vld [vmem:[#allocation6 + $0x70] sm:$0xff]  ;;  %p3371_p7 = pneg %p3370_p11  ;;  %p3376_p13 = scmp.lt.s32.totalorder %s3374_s7, %s3368_s13 }
  0x7b   : > { %2588 = vmatpush1.bf16.msra.mxu0 %v2587_v15  ;;  %v2617_v34 = vpack.c.bf16 %v298_v31, %v295_v30  ;;  %v314_v36 = vld [vmem:[#allocation6 + $0xd8] sm:$0xff]  ;;  %v3677_v37 = vld [vmem:[%s3661_s6] sm:$0xff]  ;;  %v321_v40 = vld [vmem:[#allocation6 + $0x110] sm:$0xff] }
  0x7c   : > { %2590 = vmatprep.subr.bf16.mxu0 %v2589_v16  ;;  %2614 = vmatprep.subr.bf16.mxu1 %v2613_v29  ;;  %v318_v39 = vld [vmem:[#allocation6 + $0xf8] sm:$0xff]  ;;  %v304_v41 = vld [vmem:[#allocation6 + $0x88] sm:$0xff]  ;;  %v2599_v43 = vpack.c.bf16 %v314_v36, %v311_v33  ;;  %v307_v44 = vld [vmem:[#allocation6 + $0xa0] sm:$0xff]  ;;  %p3377_p2 = por %p3376_p13, %p3375_p10 }
  0x7d   : > { %2616 = vmatpush3.bf16.msra.mxu1 %v2613_v29  ;;  %2289 = vmatprep.mubr.f32.mxu1 %v3677_v37  ;;  %v2621_v42 = vpack.c.bf16 %v304_v41, %v301_v38  ;;  %v310_v45 = vld [vmem:[#allocation6 + $0xb8] sm:$0xff]  ;;  %v2601_v46 = vpack.c.bf16 %v321_v40, %v318_v39  ;;  %v317_v47 = vld [vmem:[#allocation6 + $0xf0] sm:$0xff]  ;;  %v320_v48 = vld [vmem:[#allocation6 + $0x108] sm:$0xff]  ;;  %v3449_v41 = vmov 0.0|0.0  }
  0x7e   : > { %2618 = vmatprep.subr.bf16.mxu1 %v2617_v34  ;;  %v324_v49 = vld [vmem:[#allocation6 + $0x128] sm:$0xff]  ;;  %v327_v50 = vld [vmem:[#allocation6 + $0x140] sm:$0xff]  ;;  %v2625_v51 = vpack.c.bf16 %v310_v45, %v307_v44  ;;  %v313_v52 = vld [vmem:[#allocation6 + $0xd0] sm:$0xff]  ;;  %v2603_v54 = vpack.c.bf16 %v320_v48, %v317_v47  ;;  %p3378_p0 = pnand %p3377_p2, %p3371_p7 }
  0x7f   : > { %2592 = vmatpush1.bf16.msra.mxu0 %v2591_v21  ;;  %v316_v53 = vld [vmem:[#allocation6 + $0xe8] sm:$0xff]  ;;  %v2605_v55 = vpack.c.bf16 %v327_v50, %v324_v49  ;;  %v323_v56 = vld [vmem:[#allocation6 + $0x120] sm:$0xff]  ;;  %v326_v57 = vld [vmem:[#allocation6 + $0x138] sm:$0xff] }
  0x80   : > { %2594 = vmatprep.subr.bf16.mxu0 %v2593_v23  ;;  %v330_v58 = vld [vmem:[#allocation6 + $0x158] sm:$0xff]  ;;  %v333_v59 = vld [vmem:[#allocation6 + $0x170] sm:$0xff]  ;;  %v2629_v60 = vpack.c.bf16 %v316_v53, %v313_v52  ;;  %v319_v61 = vld [vmem:[#allocation6 + $0x100] sm:$0xff]  ;;  %v2607_v63 = vpack.c.bf16 %v326_v57, %v323_v56 }
  0x81   : > { %2620 = vmatpush3.bf16.msra.mxu1 %v2617_v34  ;;  %v322_v62 = vld [vmem:[#allocation6 + $0x118] sm:$0xff]  ;;  %v2609_v0 = vpack.c.bf16 %v333_v59, %v330_v58  ;;  %v329_v1 = vld [vmem:[#allocation6 + $0x150] sm:$0xff]  ;;  %v332_v2 = vld [vmem:[#allocation6 + $0x168] sm:$0xff] }
  0x82   : > { %2622 = vmatprep.subr.bf16.mxu1 %v2621_v42  ;;  %v571_v3 = vld [vmem:[#allocation8 + $0x8] sm:$0xff]  ;;  %v574_v4 = vld [vmem:[#allocation8 + $0x20] sm:$0xff]  ;;  %v2633_v5 = vpack.c.bf16 %v322_v62, %v319_v61  ;;  %v325_v6 = vld [vmem:[#allocation6 + $0x130] sm:$0xff]  ;;  %v2611_v9 = vpack.c.bf16 %v332_v2, %v329_v1 }
  0x83   : > { %2596 = vmatpush1.bf16.msra.mxu0 %v2595_v32  ;;  %v328_v7 = vld [vmem:[#allocation6 + $0x148] sm:$0xff]  ;;  %v3680_v10 = vpack.c.bf16 %v574_v4, %v571_v3  ;;  %v570_v11 = vld [vmem:[#allocation8] sm:$0xff]  ;;  %v573_v12 = vld [vmem:[#allocation8 + $0x18] sm:$0xff] }
  0x84   : > { %2598 = vmatprep.subr.bf16.mxu0 %v2597_v35  ;;  %v577_v13 = vld [vmem:[#allocation8 + $0x38] sm:$0xff]  ;;  %v580_v14 = vld [vmem:[#allocation8 + $0x50] sm:$0xff]  ;;  %v2637_v15 = vpack.c.bf16 %v328_v7, %v325_v6  ;;  %v331_v16 = vld [vmem:[#allocation6 + $0x160] sm:$0xff]  ;;  %v3682_v18 = vpack.c.bf16 %v573_v12, %v570_v11 }
  0x85   : > { %2624 = vmatpush3.bf16.msra.mxu1 %v2621_v42  ;;  %v334_v17 = vld [vmem:[#allocation6 + $0x178] sm:$0xff]  ;;  %v3685_v19 = vpack.c.bf16 %v580_v14, %v577_v13  ;;  %v576_v20 = vld [vmem:[#allocation8 + $0x30] sm:$0xff]  ;;  %v579_v21 = vld [vmem:[#allocation8 + $0x48] sm:$0xff] }
  0x86   : > { %2626 = vmatprep.subr.bf16.mxu1 %v2625_v51  ;;  %v583_v22 = vld [vmem:[#allocation8 + $0x68] sm:$0xff]  ;;  %v586_v23 = vld [vmem:[#allocation8 + $0x80] sm:$0xff]  ;;  %v2641_v24 = vpack.c.bf16 %v334_v17, %v331_v16  ;;  %v3691_v26 = vpack.c.bf16 %v579_v21, %v576_v20  ;;  %v585_v29 = vld [vmem:[#allocation8 + $0x78] sm:$0xff] }
  0x87   : > { %2600 = vmatpush1.bf16.msra.mxu0 %v2599_v43  ;;  %v280_v25 = vld [vmem:[%s3661_s6 + $0x8] sm:$0xff]  ;;  %v3694_v27 = vpack.c.bf16 %v586_v23, %v583_v22  ;;  %v582_v28 = vld [vmem:[#allocation8 + $0x60] sm:$0xff]  ;;  %v589_v30 = vld [vmem:[#allocation8 + $0x98] sm:$0xff] }
  0x88   : > { %2602 = vmatprep.subr.bf16.mxu0 %v2601_v46  ;;  %v592_v31 = vld [vmem:[#allocation8 + $0xb0] sm:$0xff]  ;;  %v575_v33 = vld [vmem:[#allocation8 + $0x28] sm:$0xff]  ;;  %v3699_v35 = vpack.c.bf16 %v585_v29, %v582_v28  ;;  %v598_v40 = vld [vmem:[#allocation8 + $0xe0] sm:$0xff] }
  0x89   : > { %2628 = vmatpush3.bf16.msra.mxu1 %v2625_v51  ;;  %v572_v32 = vld [vmem:[#allocation8 + $0x10] sm:$0xff]  ;;  %v3702_v36 = vpack.c.bf16 %v592_v31, %v589_v30  ;;  %v591_v38 = vld [vmem:[#allocation8 + $0xa8] sm:$0xff]  ;;  %v578_v43 = vld [vmem:[#allocation8 + $0x40] sm:$0xff] }
  0x8a   : > { %2630 = vmatprep.subr.bf16.mxu1 %v2629_v60  ;;  %v281_v34 = vld [vmem:[%s3661_s6 + $0x10] sm:$0xff]  ;;  %v595_v39 = vld [vmem:[#allocation8 + $0xc8] sm:$0xff]  ;;  %v3705_v42 = vpack.c.bf16 %v575_v33, %v572_v32  ;;  %v581_v44 = vld [vmem:[#allocation8 + $0x58] sm:$0xff] }
  0x8b   : > { %2604 = vmatpush1.bf16.msra.mxu0 %v2603_v54  ;;  %v282_v45 = vld [vmem:[%s3661_s6 + $0x18] sm:$0xff]  ;;  %v3713_v47 = vpack.c.bf16 %v598_v40, %v595_v39  ;;  %v594_v48 = vld [vmem:[#allocation8 + $0xc0] sm:$0xff]  ;;  %v604_v51 = vld [vmem:[#allocation8 + $0x110] sm:$0xff]  ;;  %v3716_v52 = vpack.c.bf16 %v581_v44, %v578_v43 }
  0x8c   : > { %2606 = vmatprep.subr.bf16.mxu0 %v2605_v55  ;;  %v597_v49 = vld [vmem:[#allocation8 + $0xd8] sm:$0xff]  ;;  %v584_v53 = vld [vmem:[#allocation8 + $0x70] sm:$0xff]  ;;  %v587_v54 = vld [vmem:[#allocation8 + $0x88] sm:$0xff] }
  0x8d   : > { %2632 = vmatpush3.bf16.msra.mxu1 %v2629_v60  ;;  %v601_v50 = vld [vmem:[#allocation8 + $0xf8] sm:$0xff]  ;;  %v283_v55 = vld [vmem:[%s3661_s6 + $0x20] sm:$0xff]  ;;  %v3722_v56 = vpack.c.bf16 %v597_v49, %v594_v48  ;;  %v600_v58 = vld [vmem:[#allocation8 + $0xf0] sm:$0xff]  ;;  %v3728_v62 = vpack.c.bf16 %v587_v54, %v584_v53 }
  0x8e   : > { %2634 = vmatprep.subr.bf16.mxu1 %v2633_v5  ;;  %v3725_v57 = vpack.c.bf16 %v604_v51, %v601_v50  ;;  %v603_v59 = vld [vmem:[#allocation8 + $0x108] sm:$0xff]  ;;  %v610_v61 = vld [vmem:[#allocation8 + $0x140] sm:$0xff]  ;;  %v285_v3 = vld [vmem:[%s3661_s6 + $0x30] sm:$0xff] }
  0x8f   : > { %2608 = vmatpush1.bf16.msra.mxu0 %v2607_v63  ;;  %v607_v60 = vld [vmem:[#allocation8 + $0x128] sm:$0xff]  ;;  %v590_v63 = vld [vmem:[#allocation8 + $0xa0] sm:$0xff]  ;;  %v3734_v2 = vpack.c.bf16 %v603_v59, %v600_v58  ;;  %v609_v6 = vld [vmem:[#allocation8 + $0x138] sm:$0xff] }
  0x90   : > { %2610 = vmatprep.subr.bf16.mxu0 %v2609_v0  ;;  %v593_v0 = vld [vmem:[#allocation8 + $0xb8] sm:$0xff]  ;;  %v284_v1 = vld [vmem:[%s3661_s6 + $0x28] sm:$0xff]  ;;  %v3738_v4 = vpack.c.bf16 %v610_v61, %v607_v60  ;;  %v596_v12 = vld [vmem:[#allocation8 + $0xd0] sm:$0xff] }
  0x91   : > { %2636 = vmatpush3.bf16.msra.mxu1 %v2633_v5  ;;  %v606_v5 = vld [vmem:[#allocation8 + $0x120] sm:$0xff]  ;;  %v613_v7 = vld [vmem:[#allocation8 + $0x158] sm:$0xff]  ;;  %v3741_v11 = vpack.c.bf16 %v593_v0, %v590_v63  ;;  %v599_v13 = vld [vmem:[#allocation8 + $0xe8] sm:$0xff] }
  0x92   : > { %2638 = vmatprep.subr.bf16.mxu1 %v2637_v15  ;;  %v3746_v14 = vpack.c.bf16 %v609_v6, %v606_v5  ;;  %v612_v17 = vld [vmem:[#allocation8 + $0x150] sm:$0xff]  ;;  %v615_v20 = vld [vmem:[#allocation8 + $0x168] sm:$0xff]  ;;  %v3753_v21 = vpack.c.bf16 %v599_v13, %v596_v12  ;;  %v602_v22 = vld [vmem:[#allocation8 + $0x100] sm:$0xff] }
  0x93   : > { %2612 = vmatpush1.bf16.msra.mxu0 %v2611_v9  ;;  %v616_v9 = vld [vmem:[#allocation8 + $0x170] sm:$0xff]  ;;  %v605_v23 = vld [vmem:[#allocation8 + $0x118] sm:$0xff]  ;;  %v611_v29 = vld [vmem:[#allocation8 + $0x148] sm:$0xff] }
  0x94   : > { %2646 = vmatprep.subr.bf16.mxu0 %v3680_v10  ;;  %v3750_v16 = vpack.c.bf16 %v616_v9, %v613_v7  ;;  %v608_v28 = vld [vmem:[#allocation8 + $0x130] sm:$0xff]  ;;  %v3769_v30 = vld [vmem:[#allocation2] sm:$0xff]  ;;  %v614_v32 = vld [vmem:[#allocation8 + $0x160] sm:$0xff] }
  0x95   : > { %2640 = vmatpush3.bf16.msra.mxu1 %v2637_v15  ;;  %v286_v15 = vld [vmem:[%s3661_s6 + $0x38] sm:$0xff]  ;;  %v3773_v31 = vpack.c.bf16 %v611_v29, %v608_v28 }
  0x96   : > { %417 = vmatmul.mubr.f32.vlgmr.msra.gmra.mrb[0].mxu0 %v3677_v37  ;;  %2642 = vmatprep.subr.bf16.mxu1 %v2641_v24  ;;  %v588_v37 = vld [vmem:[#allocation8 + $0x90] sm:$0xff]  ;;  %v617_v33 = vld [vmem:[#allocation8 + $0x178] sm:$0xff] }
  0x97   : > { %2648 = vmatpush1.bf16.msra.mxu0 %v3682_v18  ;;  %422 = vmatprep.mubr.f32.mxu0 %v3448_v8  ;;  %v3710_v46 = vpack.c.bf16 %v591_v38, %v588_v37  ;;  %v337_v37 = vlaneseq  ;;  %v335_v40 = vld [vmem:[%s4177_s3] sm:$0x7] }
  0x98   : > { %2650 = vmatprep.subr.bf16.mxu0 %v3685_v19 }
  0x99   : > { %2644 = vmatpush3.bf16.msra.mxu1 %v2641_v24  ;;  %v3760_v24 = vpack.c.bf16 %v615_v20, %v612_v17  ;;  %v338_v38 = vshrl.u32 %v337_v37, 7 }
  0x9a   : > { %423 = vmatmul.mubr.f32.gmra.mrb[2].mxu0 %v280_v25  ;;  %2677 = vmatprep.subr.bf16.mxu1 %v3449_v41 }
  0x9b   : > { %2652 = vmatpush1.bf16.msra.mxu0 %v3691_v26  ;;  %428 = vmatprep.mubr.f32.mxu0 %v3448_v8  ;;  %v347_v39 = vsub.s32 2, %v338_v38 }
  0x9c   : > { %2654 = vmatprep.subr.bf16.mxu0 %v3694_v27  ;;  %2290 = vmatmul.mubr.f32.vlgmr.msra.gmra.mrb[0].mxu1 %v280_v25  ;;  %v3764_v25 = vpack.c.bf16 %v605_v23, %v602_v22 }
  0x9d   : > { %2679 = vmatpush3.bf16.msra.mxu1 %v3705_v42  ;;  %2292 = vmatprep.mubr.f32.mxu1 %v281_v34  ;;  %v348_v43 = vrot.slane %v335_v40, %v347_v39 }
  0x9e   : > { %429 = vmatmul.mubr.f32.gmra.mrb[4].mxu0 %v281_v34  ;;  %2680 = vmatprep.subr.bf16.mxu1 %v3449_v41  ;;  %v3781_v34 = vpack.c.bf16 %v617_v33, %v614_v32  ;;  %v3845_v32 = vld [vmem:[%s4178_s4] ss:$0 sm:$0xff] }
  0x9f   : > { %2656 = vmatpush1.bf16.msra.mxu0 %v3699_v35  ;;  %434 = vmatprep.mubr.f32.mxu0 %v3448_v8 }
  0xa0   : > { %2658 = vmatprep.subr.bf16.mxu0 %v3702_v36  ;;  %2293 = vmatmul.mubr.f32.gmra.mrb[2].mxu1 %v282_v45 }
  0xa1   : > { %2682 = vmatpush3.bf16.msra.mxu1 %v3716_v52  ;;  %2295 = vmatprep.mubr.f32.mxu1 %v283_v55 }
  0xa2   : > { %435 = vmatmul.mubr.f32.gmra.mrb[6].mxu0 %v282_v45  ;;  %2683 = vmatprep.subr.bf16.mxu1 %v3449_v41 }
  0xa3   : > { %2660 = vmatpush1.bf16.msra.mxu0 %v3710_v46  ;;  %440 = vmatprep.mubr.f32.mxu0 %v3448_v8 }
  0xa4   : > { %2662 = vmatprep.subr.bf16.mxu0 %v3713_v47  ;;  %2296 = vmatmul.mubr.f32.gmra.mrb[4].mxu1 %v284_v1 }
  0xa5   : > { %2685 = vmatpush3.bf16.msra.mxu1 %v3728_v62  ;;  %2298 = vmatprep.mubr.f32.mxu1 %v285_v3 }
  0xa6   : > { %441 = vmatmul.mubr.f32.gmra.mrb[8].mxu0 %v283_v55  ;;  %2686 = vmatprep.subr.bf16.mxu1 %v3449_v41 }
  0xa7   : > { %2664 = vmatpush1.bf16.msra.mxu0 %v3722_v56  ;;  %446 = vmatprep.mubr.f32.mxu0 %v3448_v8 }
  0xa8   : > { %2666 = vmatprep.subr.bf16.mxu0 %v3725_v57  ;;  %2299 = vmatmul.mubr.f32.gmra.mrb[6].mxu1 %v286_v15 }
  0xa9   : > { %2688 = vmatpush3.bf16.msra.mxu1 %v3741_v11  ;;  %2333 = vmatprep.mubr.msk.f32.mxu1 %vm3450_vm0, %v3448_v8 }
  0xaa   : > { %447 = vmatmul.mubr.f32.gmra.mrb[10].mxu0 %v284_v1  ;;  %2689 = vmatprep.subr.bf16.mxu1 %v3449_v41  ;;  %v339_v1 = vsub.s32 0, %v338_v38 }
  0xab   : > { %2668 = vmatpush1.bf16.msra.mxu0 %v3734_v2  ;;  %452 = vmatprep.mubr.f32.mxu0 %v3448_v8 }
  0xac   : > { %2670 = vmatprep.subr.bf16.mxu0 %v3738_v4  ;;  %v3836_v5 = vrot.slane %v335_v40, %v339_v1 }
  0xad   : > { %2691 = vmatpush3.bf16.msra.mxu1 %v3753_v21 }
  0xae   : > { %453 = vmatmul.mubr.f32.gmra.mrb[12].mxu0 %v285_v3  ;;  %2692 = vmatprep.subr.bf16.mxu1 %v3449_v41  ;;  %v343_v3 = vsub.s32 1, %v338_v38 }
  0xaf   : > { %2672 = vmatpush1.bf16.msra.mxu0 %v3746_v14  ;;  %458 = vmatprep.mubr.f32.mxu0 %v3448_v8 }
  0xb0   : > { %2674 = vmatprep.subr.bf16.mxu0 %v3750_v16  ;;  %v3838_v7 = vrot.slane %v335_v40, %v343_v3 }
  0xb1   : > { %2694 = vmatpush3.bf16.msra.mxu1 %v3764_v25 }
  0xb2   : > { %459 = vmatmul.mubr.f32.gmra.mrb[14].mxu0 %v286_v15  ;;  %2695 = vmatprep.subr.bf16.mxu1 %v3449_v41 }
  0xb3   : > { %2676 = vmatpush1.bf16.msra.mxu0 %v3760_v24  ;;  %684 = vmatprep.mubr.f32.mxu0 %v3448_v8 }
  0xb4   : > { %2702 = vmatprep.subr.bf16.mxu0 %v3680_v10 }
  0xb5   : > { %2697 = vmatpush3.bf16.msra.mxu1 %v3773_v31 }
  0xb6   : > { %685 = vmatmul.mubr.f32.vlgmr.msra.gmra.mrb[0].mxu0 %v3769_v30  ;;  %2698 = vmatprep.subr.bf16.mxu1 %v3449_v41 }
  0xb7   : > { %2704 = vmatpush1.bf16.msra.mxu0 %v3682_v18  ;;  %854 = vmatprep.mubr.f32.mxu0 %v3448_v8 }
  0xb8   : > { %2706 = vmatprep.subr.bf16.mxu0 %v3685_v19 }
  0xb9   : > { %2700 = vmatpush3.bf16.msra.mxu1 %v3781_v34 }
  0xba   : > { %2733 = vmatprep.subr.bf16.mxu1 %v3449_v41 }
  0xbb   : > { %2708 = vmatpush1.bf16.msra.mxu0 %v3691_v26 }
  0xbc   : > { %2710 = vmatprep.subr.bf16.mxu0 %v3694_v27  ;;  %2334 = vmatmul.mubr.f32.vlgmr.msra.gmra.mrb[8].mxu1 %v3769_v30 }
  0xbd   : > { %2735 = vmatpush3.bf16.msra.mxu1 %v3705_v42  ;;  %2368 = vmatprep.mubr.msk.f32.mxu1 %vm3450_vm0, %v3448_v8 }
  0xbe   : > { %2736 = vmatprep.subr.bf16.mxu1 %v3449_v41 }
  0xbf   : > { %2712 = vmatpush1.bf16.msra.mxu0 %v3699_v35 }
  0xc0   : > { %2714 = vmatprep.subr.bf16.mxu0 %v3702_v36 }
  0xc1   : > { %2738 = vmatpush3.bf16.msra.mxu1 %v3716_v52 }
  0xc2   : > { %2739 = vmatprep.subr.bf16.mxu1 %v3449_v41 }
  0xc3   : > { %2716 = vmatpush1.bf16.msra.mxu0 %v3710_v46 }
  0xc4   : > { %2718 = vmatprep.subr.bf16.mxu0 %v3713_v47 }
  0xc5   : > { %2741 = vmatpush3.bf16.msra.mxu1 %v3728_v62 }
  0xc6   : > { %2742 = vmatprep.subr.bf16.mxu1 %v3449_v41 }
  0xc7   : > { %2720 = vmatpush1.bf16.msra.mxu0 %v3722_v56 }
  0xc8   : > { %2722 = vmatprep.subr.bf16.mxu0 %v3725_v57 }
  0xc9   : > { %2744 = vmatpush3.bf16.msra.mxu1 %v3741_v11 }
  0xca   : > { %2745 = vmatprep.subr.bf16.mxu1 %v3449_v41 }
  0xcb   : > { %2724 = vmatpush1.bf16.msra.mxu0 %v3734_v2 }
  0xcc   : > { %2726 = vmatprep.subr.bf16.mxu0 %v3738_v4 }
  0xcd   : > { %2747 = vmatpush3.bf16.msra.mxu1 %v3753_v21 }
  0xce   : > { %2748 = vmatprep.subr.bf16.mxu1 %v3449_v41 }
  0xcf   : > { %2728 = vmatpush1.bf16.msra.mxu0 %v3746_v14 }
  0xd0   : > { %2730 = vmatprep.subr.bf16.mxu0 %v3750_v16 }
  0xd1   : > { %2750 = vmatpush3.bf16.msra.mxu1 %v3764_v25 }
  0xd2   : > { %2751 = vmatprep.subr.bf16.mxu1 %v3449_v41 }
  0xd3   : > { %2732 = vmatpush1.bf16.msra.mxu0 %v3760_v24 }
  0xd4   : > { %2758 = vmatprep.subr.bf16.mxu0 %v3680_v10 }
  0xd5   : > { %2753 = vmatpush3.bf16.msra.mxu1 %v3773_v31 }
  0xd6   : > { %2754 = vmatprep.subr.bf16.mxu1 %v3449_v41 }
  0xd9   : > { %2756 = vmatpush3.bf16.msra.mxu1 %v3781_v34 }
  0xda   : > { %2789 = vmatprep.subr.bf16.mxu1 %v3449_v41 }
 0x16f   : > { %v2291_v44 = vpop.f32.mrb[0].mxu1 }
 0x170   : > { %v3822_v45 = vadd.f32 %v2291_v44, %v348_v43  ;;  %v531_v48 = vpop.f32.mrb[1].mxu1 }
 0x171   : > { %v532_v39 = vadd.f32 %v531_v48, %v348_v43 }
 0x173   : > { %v2294_v49 = vpop.f32.mrb[2].mxu1 }
 0x174   : > { %v3824_v50 = vadd.f32 %v2294_v49, %v348_v43  ;;  %v541_v51 = vpop.f32.mrb[3].mxu1 }
 0x175   : > { %v3826_v53 = vadd.f32 %v541_v51, %v348_v43 }
 0x177   : > { %v2297_v54 = vpop.f32.mrb[4].mxu1 }
 0x178   : > { %v3828_v55 = vadd.f32 %v2297_v54, %v348_v43  ;;  %v551_v58 = vpop.f32.mrb[5].mxu1 }
 0x179   : > { %v3830_v59 = vadd.f32 %v551_v58, %v348_v43 }
 0x17b   : > { %v2300_v60 = vpop.f32.mrb[6].mxu1 }
 0x17c   : > { %v3832_v61 = vadd.f32 %v2300_v60, %v348_v43  ;;  %v561_v63 = vpop.f32.mrb[7].mxu1 }
 0x17d   : > { %v3834_v0 = vadd.f32 %v561_v63, %v348_v43 }
 0x189   : > { %v686_v6 = vpop.f32.mrb[0].mxu0 }
 0x18a   : > { %v3093_v9 = vadd.f32 %v686_v6, %v3836_v5  ;;  %v688_v12 = vpop.f32.mrb[1].mxu0 }
 0x18b   : > { %v3094_v15 = vadd.f32 %v688_v12, %v3838_v7 }
 0x18c   : > { %v2066_v13 = vmul.f32 -1.442695, %v3093_v9 }
 0x18d   : > { %v2067_v17 = vmul.f32 -1.442695, %v3094_v15 }
 0x18e   : > { %3202 = vpow2.f32 %v2066_v13 }
 0x18f   : > { %v757_v20 = vpop.f32.mrb[8].mxu1  ;;  %3204 = vpow2.f32 %v2067_v17 }
 0x190   : > { %v2335_v22 = vpop.f32.mrb[9].mxu1  ;;  %v781_v37 = vadd.f32 %v3845_v32, %v757_v20 }
 0x198   : > { %v3203_v23 = vpop.eup %3202 }
 0x199   : > { %v765_v28 = vadd.f32 1.0, %v3203_v23  ;;  %v3205_v29 = vpop.eup %3204 }
 0x19a   : > { %v772_v33 = vadd.f32 1.0, %v3205_v29 }
 0x19b   : > { %3206 = vrcp.f32 %v765_v28 }
 0x19c   : > { %3208 = vrcp.f32 %v772_v33 }
 0x1a5   : > { %v3207_v38 = vpop.eup %3206 }
 0x1a6   : > { %v782_v40 = vmul.f32 %v3207_v38, %v781_v37  ;;  %v3209_v49 = vpop.eup %3208 }
 0x1a7   : > { %v785_v51 = vsub.f32 1.0, %v3209_v49  ;;  %v787_v60 = vmul.f32 %v3209_v49, %v3769_v30 }
 0x1a8   : > { %v783_v44 = vadd.f32 %v782_v40, %v532_v39 }
 0x1aa   : > { %3210 = vtanh.f32 %v783_v44 }
 0x1b4   : > { %v3211_v54 = vpop.eup %3210 }
 0x1b5   : > { %v786_v58 = vmul.f32 %v3211_v54, %v785_v51 }
 0x1b7   : > { %v3849_v63 = vadd.f32 %v787_v60, %v786_v58 }
 0x1b9   : > { %789 = vst [vmem:[%s3671_s26] sm:$0xff] %v3849_v63  ;;  %855 = vmatmul.mubr.f32.vlgmr.msra.gmra.mrb[2].mxu0 %v3849_v63  ;;  %2369 = vmatmul.mubr.f32.vlgmr.msra.gmra.mrb[10].mxu1 %v3849_v63 }
 0x1ba   : > { %2760 = vmatpush1.bf16.msra.mxu0 %v3682_v18  ;;  %2791 = vmatpush3.bf16.msra.mxu1 %v3705_v42 }
 0x1bb   : > { %2762 = vmatprep.subr.bf16.mxu0 %v3685_v19  ;;  %2792 = vmatprep.subr.bf16.mxu1 %v3449_v41 }
 0x1bc   : > { %1019 = vmatprep.mubr.f32.mxu0 %v3448_v8  ;;  %2403 = vmatprep.mubr.msk.f32.mxu1 %vm3450_vm0, %v3448_v8 }
 0x1be   : > { %2764 = vmatpush1.bf16.msra.mxu0 %v3691_v26  ;;  %2794 = vmatpush3.bf16.msra.mxu1 %v3716_v52 }
 0x1bf   : > { %2766 = vmatprep.subr.bf16.mxu0 %v3694_v27  ;;  %2795 = vmatprep.subr.bf16.mxu1 %v3449_v41 }
 0x1c2   : > { %2768 = vmatpush1.bf16.msra.mxu0 %v3699_v35  ;;  %2797 = vmatpush3.bf16.msra.mxu1 %v3728_v62 }
 0x1c3   : > { %2770 = vmatprep.subr.bf16.mxu0 %v3702_v36  ;;  %2798 = vmatprep.subr.bf16.mxu1 %v3449_v41 }
 0x1c6   : > { %2772 = vmatpush1.bf16.msra.mxu0 %v3710_v46  ;;  %2800 = vmatpush3.bf16.msra.mxu1 %v3741_v11 }
 0x1c7   : > { %2774 = vmatprep.subr.bf16.mxu0 %v3713_v47  ;;  %2801 = vmatprep.subr.bf16.mxu1 %v3449_v41 }
 0x1ca   : > { %2776 = vmatpush1.bf16.msra.mxu0 %v3722_v56  ;;  %2803 = vmatpush3.bf16.msra.mxu1 %v3753_v21 }
 0x1cb   : > { %2778 = vmatprep.subr.bf16.mxu0 %v3725_v57  ;;  %2804 = vmatprep.subr.bf16.mxu1 %v3449_v41 }
 0x1ce   : > { %2780 = vmatpush1.bf16.msra.mxu0 %v3734_v2  ;;  %2806 = vmatpush3.bf16.msra.mxu1 %v3764_v25 }
 0x1cf   : > { %2782 = vmatprep.subr.bf16.mxu0 %v3738_v4  ;;  %2807 = vmatprep.subr.bf16.mxu1 %v3449_v41 }
 0x1d2   : > { %2784 = vmatpush1.bf16.msra.mxu0 %v3746_v14  ;;  %2809 = vmatpush3.bf16.msra.mxu1 %v3773_v31 }
 0x1d3   : > { %2786 = vmatprep.subr.bf16.mxu0 %v3750_v16  ;;  %2810 = vmatprep.subr.bf16.mxu1 %v3449_v41 }
 0x1d6   : > { %2788 = vmatpush1.bf16.msra.mxu0 %v3760_v24  ;;  %2812 = vmatpush3.bf16.msra.mxu1 %v3781_v34 }
 0x1d7   : > { %2814 = vmatprep.subr.bf16.mxu0 %v3680_v10  ;;  %2845 = vmatprep.subr.bf16.mxu1 %v3449_v41 }
 0x28c   : > { %v856_v30 = vpop.f32.mrb[2].mxu0  ;;  %v927_v43 = vpop.f32.mrb[10].mxu1 }
 0x28d   : > { %v3095_v48 = vadd.f32 %v856_v30, %v3836_v5  ;;  %v858_v1 = vpop.f32.mrb[3].mxu0  ;;  %v2370_v3 = vpop.f32.mrb[11].mxu1  ;;  %v945_v22 = vadd.f32 %v3845_v32, %v927_v43 }
 0x28e   : > { %v3096_v9 = vadd.f32 %v858_v1, %v3838_v7 }
 0x28f   : > { %v2069_v6 = vmul.f32 -1.442695, %v3095_v48 }
 0x290   : > { %v2070_v12 = vmul.f32 -1.442695, %v3096_v9 }
 0x291   : > { %3212 = vpow2.f32 %v2069_v6 }
 0x292   : > { %3214 = vpow2.f32 %v2070_v12 }
 0x29b   : > { %v3213_v13 = vpop.eup %3212 }
 0x29c   : > { %v935_v15 = vadd.f32 1.0, %v3213_v13  ;;  %v3215_v17 = vpop.eup %3214 }
 0x29d   : > { %v942_v20 = vadd.f32 1.0, %v3215_v17 }
 0x29e   : > { %3216 = vrcp.f32 %v935_v15 }
 0x29f   : > { %3218 = vrcp.f32 %v942_v20 }
 0x2a8   : > { %v3217_v23 = vpop.eup %3216 }
 0x2a9   : > { %v946_v28 = vmul.f32 %v3217_v23, %v945_v22  ;;  %v3219_v33 = vpop.eup %3218 }
 0x2aa   : > { %v949_v37 = vsub.f32 1.0, %v3219_v33  ;;  %v951_v40 = vmul.f32 %v3219_v33, %v3849_v63 }
 0x2ab   : > { %v947_v29 = vadd.f32 %v946_v28, %v3822_v45 }
 0x2ad   : > { %3220 = vtanh.f32 %v947_v29 }
 0x2b7   : > { %v3221_v38 = vpop.eup %3220 }
 0x2b8   : > { %v950_v39 = vmul.f32 %v3221_v38, %v949_v37 }
 0x2ba   : > { %v3895_v44 = vadd.f32 %v951_v40, %v950_v39 }
 0x2bc   : > { %2071 = vst [vmem:[%s3671_s26 + $0x8] sm:$0xff] %v3895_v44  ;;  %1020 = vmatmul.mubr.f32.vlgmr.msra.gmra.mrb[4].mxu0 %v3895_v44  ;;  %2404 = vmatmul.mubr.f32.vlgmr.msra.gmra.mrb[12].mxu1 %v3895_v44 }
 0x2bd   : > { %2816 = vmatpush1.bf16.msra.mxu0 %v3682_v18  ;;  %2847 = vmatpush3.bf16.msra.mxu1 %v3705_v42 }
 0x2be   : > { %2818 = vmatprep.subr.bf16.mxu0 %v3685_v19  ;;  %2848 = vmatprep.subr.bf16.mxu1 %v3449_v41 }
 0x2bf   : > { %1184 = vmatprep.mubr.f32.mxu0 %v3448_v8  ;;  %2438 = vmatprep.mubr.msk.f32.mxu1 %vm3450_vm0, %v3448_v8 }
 0x2c1   : > { %2820 = vmatpush1.bf16.msra.mxu0 %v3691_v26  ;;  %2850 = vmatpush3.bf16.msra.mxu1 %v3716_v52 }
 0x2c2   : > { %2822 = vmatprep.subr.bf16.mxu0 %v3694_v27  ;;  %2851 = vmatprep.subr.bf16.mxu1 %v3449_v41 }
 0x2c5   : > { %2824 = vmatpush1.bf16.msra.mxu0 %v3699_v35  ;;  %2853 = vmatpush3.bf16.msra.mxu1 %v3728_v62 }
 0x2c6   : > { %2826 = vmatprep.subr.bf16.mxu0 %v3702_v36  ;;  %2854 = vmatprep.subr.bf16.mxu1 %v3449_v41 }
 0x2c9   : > { %2828 = vmatpush1.bf16.msra.mxu0 %v3710_v46  ;;  %2856 = vmatpush3.bf16.msra.mxu1 %v3741_v11 }
 0x2ca   : > { %2830 = vmatprep.subr.bf16.mxu0 %v3713_v47  ;;  %2857 = vmatprep.subr.bf16.mxu1 %v3449_v41 }
 0x2cd   : > { %2832 = vmatpush1.bf16.msra.mxu0 %v3722_v56  ;;  %2859 = vmatpush3.bf16.msra.mxu1 %v3753_v21 }
 0x2ce   : > { %2834 = vmatprep.subr.bf16.mxu0 %v3725_v57  ;;  %2860 = vmatprep.subr.bf16.mxu1 %v3449_v41 }
 0x2d1   : > { %2836 = vmatpush1.bf16.msra.mxu0 %v3734_v2  ;;  %2862 = vmatpush3.bf16.msra.mxu1 %v3764_v25 }
 0x2d2   : > { %2838 = vmatprep.subr.bf16.mxu0 %v3738_v4  ;;  %2863 = vmatprep.subr.bf16.mxu1 %v3449_v41 }
 0x2d5   : > { %2840 = vmatpush1.bf16.msra.mxu0 %v3746_v14  ;;  %2865 = vmatpush3.bf16.msra.mxu1 %v3773_v31 }
 0x2d6   : > { %2842 = vmatprep.subr.bf16.mxu0 %v3750_v16  ;;  %2866 = vmatprep.subr.bf16.mxu1 %v3449_v41 }
 0x2d9   : > { %2844 = vmatpush1.bf16.msra.mxu0 %v3760_v24  ;;  %2868 = vmatpush3.bf16.msra.mxu1 %v3781_v34 }
 0x2da   : > { %2870 = vmatprep.subr.bf16.mxu0 %v3680_v10  ;;  %2901 = vmatprep.subr.bf16.mxu1 %v3449_v41 }
 0x38f   : > { %v1021_v45 = vpop.f32.mrb[4].mxu0  ;;  %v1092_v49 = vpop.f32.mrb[12].mxu1 }
 0x390   : > { %v3097_v51 = vadd.f32 %v1021_v45, %v3836_v5  ;;  %v1023_v54 = vpop.f32.mrb[5].mxu0  ;;  %v2405_v58 = vpop.f32.mrb[13].mxu1  ;;  %v1110_v6 = vadd.f32 %v3845_v32, %v1092_v49 }
 0x391   : > { %v3098_v63 = vadd.f32 %v1023_v54, %v3838_v7 }
 0x392   : > { %v2072_v60 = vmul.f32 -1.442695, %v3097_v51 }
 0x393   : > { %v2073_v30 = vmul.f32 -1.442695, %v3098_v63 }
 0x394   : > { %3222 = vpow2.f32 %v2072_v60 }
 0x395   : > { %3224 = vpow2.f32 %v2073_v30 }
 0x39e   : > { %v3223_v43 = vpop.eup %3222 }
 0x39f   : > { %v1100_v48 = vadd.f32 1.0, %v3223_v43  ;;  %v3225_v1 = vpop.eup %3224 }
 0x3a0   : > { %v1107_v3 = vadd.f32 1.0, %v3225_v1 }
 0x3a1   : > { %3226 = vrcp.f32 %v1100_v48 }
 0x3a2   : > { %3228 = vrcp.f32 %v1107_v3 }
 0x3ab   : > { %v3227_v9 = vpop.eup %3226 }
 0x3ac   : > { %v1111_v12 = vmul.f32 %v3227_v9, %v1110_v6  ;;  %v3229_v15 = vpop.eup %3228 }
 0x3ad   : > { %v1114_v17 = vsub.f32 1.0, %v3229_v15  ;;  %v1116_v23 = vmul.f32 %v3229_v15, %v3895_v44 }
 0x3ae   : > { %v1112_v13 = vadd.f32 %v1111_v12, %v3826_v53 }
 0x3b0   : > { %3230 = vtanh.f32 %v1112_v13 }
 0x3ba   : > { %v3231_v20 = vpop.eup %3230 }
 0x3bb   : > { %v1115_v22 = vmul.f32 %v3231_v20, %v1114_v17 }
 0x3bd   : > { %v3941_v28 = vadd.f32 %v1116_v23, %v1115_v22 }
 0x3bf   : > { %2074 = vst [vmem:[%s3671_s26 + $0x10] sm:$0xff] %v3941_v28  ;;  %1185 = vmatmul.mubr.f32.vlgmr.msra.gmra.mrb[6].mxu0 %v3941_v28  ;;  %2439 = vmatmul.mubr.f32.vlgmr.msra.gmra.mrb[14].mxu1 %v3941_v28 }
 0x3c0   : > { %2872 = vmatpush1.bf16.msra.mxu0 %v3682_v18  ;;  %2903 = vmatpush3.bf16.msra.mxu1 %v3705_v42 }
 0x3c1   : > { %2874 = vmatprep.subr.bf16.mxu0 %v3685_v19  ;;  %2904 = vmatprep.subr.bf16.mxu1 %v3449_v41 }
 0x3c2   : > { %1349 = vmatprep.mubr.f32.mxu0 %v3448_v8  ;;  %2473 = vmatprep.mubr.msk.f32.mxu1 %vm3450_vm0, %v3448_v8 }
 0x3c4   : > { %2876 = vmatpush1.bf16.msra.mxu0 %v3691_v26  ;;  %2906 = vmatpush3.bf16.msra.mxu1 %v3716_v52 }
 0x3c5   : > { %2878 = vmatprep.subr.bf16.mxu0 %v3694_v27  ;;  %2907 = vmatprep.subr.bf16.mxu1 %v3449_v41 }
 0x3c8   : > { %2880 = vmatpush1.bf16.msra.mxu0 %v3699_v35  ;;  %2909 = vmatpush3.bf16.msra.mxu1 %v3728_v62 }
 0x3c9   : > { %2882 = vmatprep.subr.bf16.mxu0 %v3702_v36  ;;  %2910 = vmatprep.subr.bf16.mxu1 %v3449_v41 }
 0x3cc   : > { %2884 = vmatpush1.bf16.msra.mxu0 %v3710_v46  ;;  %2912 = vmatpush3.bf16.msra.mxu1 %v3741_v11 }
 0x3cd   : > { %2886 = vmatprep.subr.bf16.mxu0 %v3713_v47  ;;  %2913 = vmatprep.subr.bf16.mxu1 %v3449_v41 }
 0x3d0   : > { %2888 = vmatpush1.bf16.msra.mxu0 %v3722_v56  ;;  %2915 = vmatpush3.bf16.msra.mxu1 %v3753_v21 }
 0x3d1   : > { %2890 = vmatprep.subr.bf16.mxu0 %v3725_v57  ;;  %2916 = vmatprep.subr.bf16.mxu1 %v3449_v41 }
 0x3d4   : > { %2892 = vmatpush1.bf16.msra.mxu0 %v3734_v2  ;;  %2918 = vmatpush3.bf16.msra.mxu1 %v3764_v25 }
 0x3d5   : > { %2894 = vmatprep.subr.bf16.mxu0 %v3738_v4  ;;  %2919 = vmatprep.subr.bf16.mxu1 %v3449_v41 }
 0x3d8   : > { %2896 = vmatpush1.bf16.msra.mxu0 %v3746_v14  ;;  %2921 = vmatpush3.bf16.msra.mxu1 %v3773_v31 }
 0x3d9   : > { %2898 = vmatprep.subr.bf16.mxu0 %v3750_v16  ;;  %2922 = vmatprep.subr.bf16.mxu1 %v3449_v41 }
 0x3dc   : > { %2900 = vmatpush1.bf16.msra.mxu0 %v3760_v24  ;;  %2924 = vmatpush3.bf16.msra.mxu1 %v3781_v34 }
 0x3dd   : > { %2926 = vmatprep.subr.bf16.mxu0 %v3680_v10  ;;  %2957 = vmatprep.subr.bf16.mxu1 %v3449_v41 }
 0x492   : > { %v1186_v53 = vpop.f32.mrb[6].mxu0  ;;  %v1257_v29 = vpop.f32.mrb[14].mxu1 }
 0x493   : > { %v3099_v33 = vadd.f32 %v1186_v53, %v3836_v5  ;;  %v1188_v37 = vpop.f32.mrb[7].mxu0  ;;  %v2440_v38 = vpop.f32.mrb[15].mxu1  ;;  %v1275_v58 = vadd.f32 %v3845_v32, %v1257_v29 }
 0x494   : > { %v3100_v40 = vadd.f32 %v1188_v37, %v3838_v7 }
 0x495   : > { %v2075_v39 = vmul.f32 -1.442695, %v3099_v33 }
 0x496   : > { %v2076_v44 = vmul.f32 -1.442695, %v3100_v40 }
 0x497   : > { %3232 = vpow2.f32 %v2075_v39 }
 0x498   : > { %3234 = vpow2.f32 %v2076_v44 }
 0x4a1   : > { %v3233_v45 = vpop.eup %3232 }
 0x4a2   : > { %v1265_v49 = vadd.f32 1.0, %v3233_v45  ;;  %v3235_v51 = vpop.eup %3234 }
 0x4a3   : > { %v1272_v54 = vadd.f32 1.0, %v3235_v51 }
 0x4a4   : > { %3236 = vrcp.f32 %v1265_v49 }
 0x4a5   : > { %3238 = vrcp.f32 %v1272_v54 }
 0x4ae   : > { %v3237_v60 = vpop.eup %3236 }
 0x4af   : > { %v1276_v63 = vmul.f32 %v3237_v60, %v1275_v58  ;;  %v3239_v43 = vpop.eup %3238 }
 0x4b0   : > { %v1279_v48 = vsub.f32 1.0, %v3239_v43  ;;  %v1281_v6 = vmul.f32 %v3239_v43, %v3941_v28 }
 0x4b1   : > { %v1277_v30 = vadd.f32 %v1276_v63, %v3824_v50 }
 0x4b3   : > { %3240 = vtanh.f32 %v1277_v30 }
 0x4bd   : > { %v3241_v1 = vpop.eup %3240 }
 0x4be   : > { %v1280_v3 = vmul.f32 %v3241_v1, %v1279_v48 }
 0x4c0   : > { %v3987_v9 = vadd.f32 %v1281_v6, %v1280_v3 }
 0x4c2   : > { %2077 = vst [vmem:[%s3671_s26 + $0x18] sm:$0xff] %v3987_v9  ;;  %1350 = vmatmul.mubr.f32.vlgmr.msra.gmra.mrb[8].mxu0 %v3987_v9  ;;  %2474 = vmatmul.mubr.f32.vlgmr.msra.gmra.mrb[16].mxu1 %v3987_v9 }
 0x4c3   : > { %2928 = vmatpush1.bf16.msra.mxu0 %v3682_v18  ;;  %2959 = vmatpush3.bf16.msra.mxu1 %v3705_v42 }
 0x4c4   : > { %2930 = vmatprep.subr.bf16.mxu0 %v3685_v19  ;;  %2960 = vmatprep.subr.bf16.mxu1 %v3449_v41 }
 0x4c5   : > { %1514 = vmatprep.mubr.f32.mxu0 %v3448_v8  ;;  %2508 = vmatprep.mubr.msk.f32.mxu1 %vm3450_vm0, %v3448_v8 }
 0x4c7   : > { %2932 = vmatpush1.bf16.msra.mxu0 %v3691_v26  ;;  %2962 = vmatpush3.bf16.msra.mxu1 %v3716_v52 }
 0x4c8   : > { %2934 = vmatprep.subr.bf16.mxu0 %v3694_v27  ;;  %2963 = vmatprep.subr.bf16.mxu1 %v3449_v41 }
 0x4cb   : > { %2936 = vmatpush1.bf16.msra.mxu0 %v3699_v35  ;;  %2965 = vmatpush3.bf16.msra.mxu1 %v3728_v62 }
 0x4cc   : > { %2938 = vmatprep.subr.bf16.mxu0 %v3702_v36  ;;  %2966 = vmatprep.subr.bf16.mxu1 %v3449_v41 }
 0x4cf   : > { %2940 = vmatpush1.bf16.msra.mxu0 %v3710_v46  ;;  %2968 = vmatpush3.bf16.msra.mxu1 %v3741_v11 }
 0x4d0   : > { %2942 = vmatprep.subr.bf16.mxu0 %v3713_v47  ;;  %2969 = vmatprep.subr.bf16.mxu1 %v3449_v41 }
 0x4d3   : > { %2944 = vmatpush1.bf16.msra.mxu0 %v3722_v56  ;;  %2971 = vmatpush3.bf16.msra.mxu1 %v3753_v21 }
 0x4d4   : > { %2946 = vmatprep.subr.bf16.mxu0 %v3725_v57  ;;  %2972 = vmatprep.subr.bf16.mxu1 %v3449_v41 }
 0x4d7   : > { %2948 = vmatpush1.bf16.msra.mxu0 %v3734_v2  ;;  %2974 = vmatpush3.bf16.msra.mxu1 %v3764_v25 }
 0x4d8   : > { %2950 = vmatprep.subr.bf16.mxu0 %v3738_v4  ;;  %2975 = vmatprep.subr.bf16.mxu1 %v3449_v41 }
 0x4db   : > { %2952 = vmatpush1.bf16.msra.mxu0 %v3746_v14  ;;  %2977 = vmatpush3.bf16.msra.mxu1 %v3773_v31 }
 0x4dc   : > { %2954 = vmatprep.subr.bf16.mxu0 %v3750_v16  ;;  %2978 = vmatprep.subr.bf16.mxu1 %v3449_v41 }
 0x4df   : > { %2956 = vmatpush1.bf16.msra.mxu0 %v3760_v24  ;;  %2980 = vmatpush3.bf16.msra.mxu1 %v3781_v34 }
 0x4e0   : > { %2982 = vmatprep.subr.bf16.mxu0 %v3680_v10  ;;  %3013 = vmatprep.subr.bf16.mxu1 %v3449_v41 }
 0x595   : > { %v1351_v50 = vpop.f32.mrb[8].mxu0  ;;  %v1422_v12 = vpop.f32.mrb[16].mxu1 }
 0x596   : > { %v3101_v13 = vadd.f32 %v1351_v50, %v3836_v5  ;;  %v1353_v15 = vpop.f32.mrb[9].mxu0  ;;  %v2475_v17 = vpop.f32.mrb[17].mxu1  ;;  %v1440_v37 = vadd.f32 %v3845_v32, %v1422_v12 }
 0x597   : > { %v3102_v22 = vadd.f32 %v1353_v15, %v3838_v7 }
 0x598   : > { %v2078_v20 = vmul.f32 -1.442695, %v3101_v13 }
 0x599   : > { %v2079_v23 = vmul.f32 -1.442695, %v3102_v22 }
 0x59a   : > { %3242 = vpow2.f32 %v2078_v20 }
 0x59b   : > { %3244 = vpow2.f32 %v2079_v23 }
 0x5a4   : > { %v3243_v28 = vpop.eup %3242 }
 0x5a5   : > { %v1430_v53 = vadd.f32 1.0, %v3243_v28  ;;  %v3245_v29 = vpop.eup %3244 }
 0x5a6   : > { %v1437_v33 = vadd.f32 1.0, %v3245_v29 }
 0x5a7   : > { %3246 = vrcp.f32 %v1430_v53 }
 0x5a8   : > { %3248 = vrcp.f32 %v1437_v33 }
 0x5b1   : > { %v3247_v38 = vpop.eup %3246 }
 0x5b2   : > { %v1441_v39 = vmul.f32 %v3247_v38, %v1440_v37  ;;  %v3249_v44 = vpop.eup %3248 }
 0x5b3   : > { %v1444_v45 = vsub.f32 1.0, %v3249_v44  ;;  %v1446_v54 = vmul.f32 %v3249_v44, %v3987_v9 }
 0x5b4   : > { %v1442_v40 = vadd.f32 %v1441_v39, %v3830_v59 }
 0x5b6   : > { %3250 = vtanh.f32 %v1442_v40 }
 0x5c0   : > { %v3251_v49 = vpop.eup %3250 }
 0x5c1   : > { %v1445_v51 = vmul.f32 %v3251_v49, %v1444_v45 }
 0x5c3   : > { %v4033_v58 = vadd.f32 %v1446_v54, %v1445_v51 }
 0x5c5   : > { %2080 = vst [vmem:[%s3671_s26 + $0x20] sm:$0xff] %v4033_v58  ;;  %1515 = vmatmul.mubr.f32.vlgmr.msra.gmra.mrb[10].mxu0 %v4033_v58  ;;  %2509 = vmatmul.mubr.f32.vlgmr.msra.gmra.mrb[18].mxu1 %v4033_v58 }
 0x5c6   : > { %2984 = vmatpush1.bf16.msra.mxu0 %v3682_v18  ;;  %3015 = vmatpush3.bf16.msra.mxu1 %v3705_v42 }
 0x5c7   : > { %2986 = vmatprep.subr.bf16.mxu0 %v3685_v19  ;;  %3016 = vmatprep.subr.bf16.mxu1 %v3449_v41 }
 0x5c8   : > { %1679 = vmatprep.mubr.f32.mxu0 %v3448_v8  ;;  %2543 = vmatprep.mubr.msk.f32.mxu1 %vm3450_vm0, %v3448_v8 }
 0x5ca   : > { %2988 = vmatpush1.bf16.msra.mxu0 %v3691_v26  ;;  %3018 = vmatpush3.bf16.msra.mxu1 %v3716_v52 }
 0x5cb   : > { %2990 = vmatprep.subr.bf16.mxu0 %v3694_v27  ;;  %3019 = vmatprep.subr.bf16.mxu1 %v3449_v41 }
 0x5ce   : > { %2992 = vmatpush1.bf16.msra.mxu0 %v3699_v35  ;;  %3021 = vmatpush3.bf16.msra.mxu1 %v3728_v62 }
 0x5cf   : > { %2994 = vmatprep.subr.bf16.mxu0 %v3702_v36  ;;  %3022 = vmatprep.subr.bf16.mxu1 %v3449_v41 }
 0x5d2   : > { %2996 = vmatpush1.bf16.msra.mxu0 %v3710_v46  ;;  %3024 = vmatpush3.bf16.msra.mxu1 %v3741_v11 }
 0x5d3   : > { %2998 = vmatprep.subr.bf16.mxu0 %v3713_v47  ;;  %3025 = vmatprep.subr.bf16.mxu1 %v3449_v41 }
 0x5d6   : > { %3000 = vmatpush1.bf16.msra.mxu0 %v3722_v56  ;;  %3027 = vmatpush3.bf16.msra.mxu1 %v3753_v21 }
 0x5d7   : > { %3002 = vmatprep.subr.bf16.mxu0 %v3725_v57  ;;  %3028 = vmatprep.subr.bf16.mxu1 %v3449_v41 }
 0x5da   : > { %3004 = vmatpush1.bf16.msra.mxu0 %v3734_v2  ;;  %3030 = vmatpush3.bf16.msra.mxu1 %v3764_v25 }
 0x5db   : > { %3006 = vmatprep.subr.bf16.mxu0 %v3738_v4  ;;  %3031 = vmatprep.subr.bf16.mxu1 %v3449_v41 }
 0x5de   : > { %3008 = vmatpush1.bf16.msra.mxu0 %v3746_v14  ;;  %3033 = vmatpush3.bf16.msra.mxu1 %v3773_v31 }
 0x5df   : > { %3010 = vmatprep.subr.bf16.mxu0 %v3750_v16  ;;  %3034 = vmatprep.subr.bf16.mxu1 %v3449_v41 }
 0x5e2   : > { %3012 = vmatpush1.bf16.msra.mxu0 %v3760_v24  ;;  %3036 = vmatpush3.bf16.msra.mxu1 %v3781_v34 }
 0x5e3   : > { %3038 = vmatprep.subr.bf16.mxu0 %v3680_v10  ;;  %3069 = vmatprep.subr.bf16.mxu1 %v3449_v41 }
 0x698   : > { %v1516_v59 = vpop.f32.mrb[10].mxu0  ;;  %v1587_v60 = vpop.f32.mrb[18].mxu1 }
 0x699   : > { %v3103_v63 = vadd.f32 %v1516_v59, %v3836_v5  ;;  %v1518_v30 = vpop.f32.mrb[11].mxu0  ;;  %v2510_v43 = vpop.f32.mrb[19].mxu1  ;;  %v1605_v12 = vadd.f32 %v3845_v32, %v1587_v60 }
 0x69a   : > { %v3104_v1 = vadd.f32 %v1518_v30, %v3838_v7 }
 0x69b   : > { %v2081_v48 = vmul.f32 -1.442695, %v3103_v63 }
 0x69c   : > { %v2082_v3 = vmul.f32 -1.442695, %v3104_v1 }
 0x69d   : > { %3252 = vpow2.f32 %v2081_v48 }
 0x69e   : > { %3254 = vpow2.f32 %v2082_v3 }
 0x6a7   : > { %v3253_v6 = vpop.eup %3252 }
 0x6a8   : > { %v1595_v9 = vadd.f32 1.0, %v3253_v6  ;;  %v3255_v50 = vpop.eup %3254 }
 0x6a9   : > { %v1602_v10 = vadd.f32 1.0, %v3255_v50 }
 0x6aa   : > { %3256 = vrcp.f32 %v1595_v9 }
 0x6ab   : > { %3258 = vrcp.f32 %v1602_v10 }
 0x6b4   : > { %v3257_v13 = vpop.eup %3256 }
 0x6b5   : > { %v1606_v15 = vmul.f32 %v3257_v13, %v1605_v12  ;;  %v3259_v20 = vpop.eup %3258 }
 0x6b6   : > { %v1609_v22 = vsub.f32 1.0, %v3259_v20  ;;  %v1611_v53 = vmul.f32 %v3259_v20, %v4033_v58 }
 0x6b7   : > { %v1607_v17 = vadd.f32 %v1606_v15, %v3828_v55 }
 0x6b9   : > { %3260 = vtanh.f32 %v1607_v17 }
 0x6c3   : > { %v3261_v23 = vpop.eup %3260 }
 0x6c4   : > { %v1610_v28 = vmul.f32 %v3261_v23, %v1609_v22 }
 0x6c6   : > { %v1612_v29 = vadd.f32 %v1611_v53, %v1610_v28 }
 0x6c8   : > { %2083 = vst [vmem:[%s3671_s26 + $0x28] sm:$0xff] %v1612_v29  ;;  %1680 = vmatmul.mubr.f32.vlgmr.msra.gmra.mrb[12].mxu0 %v1612_v29  ;;  %2544 = vmatmul.mubr.f32.vlgmr.msra.gmra.mrb[20].mxu1 %v1612_v29 }
 0x6c9   : > { %3040 = vmatpush1.bf16.msra.mxu0 %v3682_v18  ;;  %3071 = vmatpush3.bf16.msra.mxu1 %v3705_v42 }
 0x6ca   : > { %3042 = vmatprep.subr.bf16.mxu0 %v3685_v19  ;;  %3072 = vmatprep.subr.bf16.mxu1 %v3449_v41 }
 0x6cb   : > { %1844 = vmatprep.mubr.f32.mxu0 %v3448_v8  ;;  %2578 = vmatprep.mubr.msk.f32.mxu1 %vm3450_vm0, %v3448_v8 }
 0x6cd   : > { %3044 = vmatpush1.bf16.msra.mxu0 %v3691_v26  ;;  %3074 = vmatpush3.bf16.msra.mxu1 %v3716_v52 }
 0x6ce   : > { %3046 = vmatprep.subr.bf16.mxu0 %v3694_v27  ;;  %3075 = vmatprep.subr.bf16.mxu1 %v3449_v41 }
 0x6d1   : > { %3048 = vmatpush1.bf16.msra.mxu0 %v3699_v35  ;;  %3077 = vmatpush3.bf16.msra.mxu1 %v3728_v62 }
 0x6d2   : > { %3050 = vmatprep.subr.bf16.mxu0 %v3702_v36  ;;  %3078 = vmatprep.subr.bf16.mxu1 %v3449_v41 }
 0x6d5   : > { %3052 = vmatpush1.bf16.msra.mxu0 %v3710_v46  ;;  %3080 = vmatpush3.bf16.msra.mxu1 %v3741_v11 }
 0x6d6   : > { %3054 = vmatprep.subr.bf16.mxu0 %v3713_v47  ;;  %3081 = vmatprep.subr.bf16.mxu1 %v3449_v41 }
 0x6d9   : > { %3056 = vmatpush1.bf16.msra.mxu0 %v3722_v56  ;;  %3083 = vmatpush3.bf16.msra.mxu1 %v3753_v21 }
 0x6da   : > { %3058 = vmatprep.subr.bf16.mxu0 %v3725_v57  ;;  %3084 = vmatprep.subr.bf16.mxu1 %v3449_v41 }
 0x6dd   : > { %3060 = vmatpush1.bf16.msra.mxu0 %v3734_v2  ;;  %3086 = vmatpush3.bf16.msra.mxu1 %v3764_v25 }
 0x6de   : > { %3062 = vmatprep.subr.bf16.mxu0 %v3738_v4  ;;  %3087 = vmatprep.subr.bf16.mxu1 %v3449_v41 }
 0x6e1   : > { %3064 = vmatpush1.bf16.msra.mxu0 %v3746_v14  ;;  %3089 = vmatpush3.bf16.msra.mxu1 %v3773_v31 }
 0x6e2   : > { %3066 = vmatprep.subr.bf16.mxu0 %v3750_v16  ;;  %3090 = vmatprep.subr.bf16.mxu1 %v3449_v41 }
 0x6e5   : > { %3068 = vmatpush1.bf16.msra.mxu0 %v3760_v24  ;;  %3092 = vmatpush3.bf16.msra.mxu1 %v3781_v34 }
 0x79b   : > { %v1681_v8 = vpop.f32.mrb[12].mxu0  ;;  %v1752_v18 = vpop.f32.mrb[20].mxu1 }
 0x79c   : > { %v3105_v19 = vadd.f32 %v1681_v8, %v3836_v5  ;;  %v1683_v26 = vpop.f32.mrb[13].mxu0  ;;  %v2545_v27 = vpop.f32.mrb[21].mxu1  ;;  %v1770_v56 = vadd.f32 %v3845_v32, %v1752_v18 }
 0x79d   : > { %v3106_v36 = vadd.f32 %v1683_v26, %v3838_v7 }
 0x79e   : > { %v2084_v35 = vmul.f32 -1.442695, %v3105_v19 }
 0x79f   : > { %v2085_v42 = vmul.f32 -1.442695, %v3106_v36 }
 0x7a0   : > { %3262 = vpow2.f32 %v2084_v35 }
 0x7a1   : > { %3264 = vpow2.f32 %v2085_v42 }
 0x7aa   : > { %v3263_v46 = vpop.eup %3262 }
 0x7ab   : > { %v1760_v47 = vadd.f32 1.0, %v3263_v46  ;;  %v3265_v41 = vpop.eup %3264 }
 0x7ac   : > { %v1767_v52 = vadd.f32 1.0, %v3265_v41 }
 0x7ad   : > { %3266 = vrcp.f32 %v1760_v47 }
 0x7ae   : > { %3268 = vrcp.f32 %v1767_v52 }
 0x7b7   : > { %v3267_v57 = vpop.eup %3266 }
 0x7b8   : > { %v1771_v62 = vmul.f32 %v3267_v57, %v1770_v56  ;;  %v3269_v4 = vpop.eup %3268 }
 0x7b9   : > { %v1774_v11 = vsub.f32 1.0, %v3269_v4  ;;  %v1776_v21 = vmul.f32 %v3269_v4, %v1612_v29 }
 0x7ba   : > { %v1772_v2 = vadd.f32 %v1771_v62, %v3834_v0 }
 0x7bc   : > { %3270 = vtanh.f32 %v1772_v2 }
 0x7c6   : > { %v3271_v14 = vpop.eup %3270 }
 0x7c7   : > { %v1775_v16 = vmul.f32 %v3271_v14, %v1774_v11 }
 0x7c9   : > { %v1777_v24 = vadd.f32 %v1776_v21, %v1775_v16 }
 0x7cb   : > { %2086 = vst [vmem:[%s3671_s26 + $0x30] sm:$0xff] %v1777_v24  ;;  %1845 = vmatmul.mubr.f32.vlgmr.msra.gmra.mrb[14].mxu0 %v1777_v24  ;;  %2579 = vmatmul.mubr.f32.vlgmr.msra.gmra.mrb[22].mxu1 %v1777_v24 }
 0x89e   : > { %v1846_v25 = vpop.f32.mrb[14].mxu0  ;;  %v1917_v31 = vpop.f32.mrb[22].mxu1 }
 0x89f   : > { %v3107_v34 = vadd.f32 %v1846_v25, %v3836_v5  ;;  %v1848_v55 = vpop.f32.mrb[15].mxu0  ;;  %v2580_v33 = vpop.f32.mrb[23].mxu1  ;;  %v1935_v49 = vadd.f32 %v3845_v32, %v1917_v31 }
 0x8a0   : > { %v3108_v38 = vadd.f32 %v1848_v55, %v3838_v7 }
 0x8a1   : > { %v2087_v37 = vmul.f32 -1.442695, %v3107_v34 }
 0x8a2   : > { %v2088_v0 = vmul.f32 -1.442695, %v3108_v38 }
 0x8a3   : > { %3272 = vpow2.f32 %v2087_v37 }
 0x8a4   : > { %3274 = vpow2.f32 %v2088_v0 }
 0x8ad   : > { %v3273_v39 = vpop.eup %3272 }
 0x8ae   : > { %v1925_v40 = vadd.f32 1.0, %v3273_v39  ;;  %v3275_v44 = vpop.eup %3274 }
 0x8af   : > { %v1932_v45 = vadd.f32 1.0, %v3275_v44 }
 0x8b0   : > { %3276 = vrcp.f32 %v1925_v40 }
 0x8b1   : > { %3278 = vrcp.f32 %v1932_v45 }
 0x8ba   : > { %v3277_v51 = vpop.eup %3276 }
 0x8bb   : > { %v1936_v5 = vmul.f32 %v3277_v51, %v1935_v49  ;;  %v3279_v7 = vpop.eup %3278 }
 0x8bc   : > { %v1939_v58 = vsub.f32 1.0, %v3279_v7  ;;  %v1941_v63 = vmul.f32 %v3279_v7, %v1777_v24 }
 0x8bd   : > { %v1937_v54 = vadd.f32 %v1936_v5, %v3832_v61 }
 0x8bf   : > { %3280 = vtanh.f32 %v1937_v54 }
 0x8c9   : > { %v3281_v59 = vpop.eup %3280 }
 0x8ca   : > { %v1940_v60 = vmul.f32 %v3281_v59, %v1939_v58 }
 0x8cc   : > { %v1942_v61 = vadd.f32 %v1941_v63, %v1940_v60 }
 0x8ce   : > { %2089 = vst [vmem:[%s3671_s26 + $0x38] sm:$0xff] %v1942_v61  ;;  %1945 = vst [vmem:[#allocation2] sm:$0xff] %v1942_v61 }
 0x8cf   : > { %3381 = shalt.err (!%p3378_p0)
}
 0x8d0   : > { %s3382_s6 = scalar_lea.hbm %s4127_s9, 1024  ;;  %s3386_s8 = scalar_lea.hbm %s4179_s5, 2048 }
 0x8d1   : > { %p3383_p6 = scmp.ne.s32.totalorder %s4127_s9, %s3382_s6  ;;  %p3387_p5 = scmp.lt.u32.totalorder %s4127_s9, %s4179_s5 }
 0x8d2   : > { %p3388_p9 = scmp.lt.u32.totalorder %s3386_s8, %s3382_s6  ;;  %p3390_p3 = scmp.lt.u32.totalorder %s3382_s6, %s4127_s9 }
 0x8d3   : > { %p3384_p8 = pnand %p3383_p6, %p4194_p1 }
 0x8d4   : > { %p3389_p12 = por %p3388_p9, %p3387_p5 }
 0x8d5   : > { %p3385_p4 = pneg %p3384_p8 }
 0x8d6   : > { %p3391_p11 = por %p3390_p3, %p3389_p12 }
 0x8d8   : > { %p3392_p7 = pnand %p3391_p11, %p3385_p4 }
 0x8da   : > { %3395 = shalt.err (!%p3392_p7)
}
 0x8db   : > { %s3452_s28 = smov 128   ;;  %s3453_s15 = smov 8  }
 0x8dc   : > { %3135 = dma.vmem_to_hbm [thread:$0]  (%p4194_p1), %s4129_s30, 1024, %s4127_s9, %s1947_s12, %s3452_s28, %s3452_s28, %s3453_s15  }
 0x8dd PF: > { %s1975_s16 = sand.u32 1, %s3426_s18   ;;  %p4195_p10 = scmp.ne.s32.totalorder %s4184_s25, 0 }
 0x8de   : > { %p4196_p13 = scmp.ge.s32.totalorder %s3438_s21, 2  ;;  %s1976_s13 = scalar_lea.sflag [#allocation5], %s1975_s16 }
 0x8e0   : > { %p3149_p2 = pnand %p4196_p13, %p4195_p10 }
 0x8e2   : > { %3421 = dma.done.wait (!%p3149_p2), %s1976_s13, 1024  }
 0x8e3   : > { %3423 = vsyncadd (!%p3149_p2), %s1976_s13, 4294966272  ;;  %p19_p0 = scmp.ge.s32.totalorder %s3595_s14, 4   ;;  %s4197_s18 = smov %s3430_s19 }
 0x8e4   : > { %s4198_s19 = smov %s3434_s20  ;;  %s4199_s20 = smov %s3611_s27 }
 0x8e5   : > { %s4200_s21 = smov %s3595_s14  ;;  %21 = sbr.rel (!%p19_p0) target bundleno = 6 (0x6), region = 104 }
 0x8ec   :  { %1981 = vsyncpa [#allocation4], 1 }
 0x8ed   :  { %1983 = vsyncpa [#allocation4 + $0x1], 1 }
 0x8ee   :  { %1984 = vsyncpa [#allocation7], 1 }
 0x8ef   :  { %1985 = vsyncpa [#allocation5], 1 }
 0x8f0   :  { %1987 = vsyncpa [#allocation5 + $0x1], 1 }

</bundles_post_ra>
